<compile_context>
chip_gen: v7x
topology: tpu7x:2x2x1
jax: 0.10.0
libtpu: 0.0.40
codegen_flags: <defaults>
</compile_context>

<pallas_src>
import functools

import jax
import jax.numpy as jnp
from jax.experimental import pallas as pl
from jax.experimental.pallas import tpu as pltpu


def _round_up(x: int, m: int) -> int:
    return (x + m - 1) // m * m


def _siren_kernel(x_ref, wt_ref, b_ref, o_ref):
    # MXU matmul with f32 accumulation; w0 is already folded into wt / b.
    y = jnp.dot(x_ref[...], wt_ref[...], preferred_element_type=jnp.float32)
    y = y + b_ref[...]                         # (tm, tn) + (1, tn)
    o_ref[...] = jnp.sin(y).astype(o_ref.dtype)


@functools.partial(jax.jit, static_argnames=("w0", "tm", "compute_dtype"))
def siren_layer(x, weight, bias, *, w0=30.0, tm=512, compute_dtype=None):
    """x: (..., in_dim), weight: (out_dim, in_dim) [PyTorch layout], bias: (out_dim,)."""
    orig_shape = x.shape
    in_dim = orig_shape[-1]
    out_dim = weight.shape[0]
    out_dtype = x.dtype

    x2 = x.reshape(-1, in_dim)
    N = x2.shape[0]

    # Fold w0 into params: sin(w0*(x W^T + b)) == sin(x (w0 W)^T + (w0 b)).
    wt = (w0 * weight).T                              # (in_dim, out_dim)
    b2 = (w0 * bias).reshape(1, out_dim).astype(jnp.float32)

    # Optional reduced-precision operands (e.g. jnp.bfloat16 on v6e/v7x);
    # accumulation and the sin() argument stay in f32.
    if compute_dtype is not None:
        x2 = x2.astype(compute_dtype)
        wt = wt.astype(compute_dtype)
    else:
        wt = wt.astype(x2.dtype)

    # Pad feature dims to multiples of 128: K fills the MXU, padded out_dim
    # gives lane-dense (unmasked) vst stores.
    k_pad = _round_up(in_dim, 128)
    n_pad = _round_up(out_dim, 128)
    if k_pad != in_dim:
        x2 = jnp.pad(x2, ((0, 0), (0, k_pad - in_dim)))
        wt = jnp.pad(wt, ((0, k_pad - in_dim), (0, 0)))
    if n_pad != out_dim:
        wt = jnp.pad(wt, ((0, 0), (0, n_pad - out_dim)))
        b2 = jnp.pad(b2, ((0, 0), (0, n_pad - out_dim)))

    # Out-feature tile: keep the weight tile VMEM-friendly for wide layers.
    # tn must be a multiple of 128 that divides n_pad.
    tn = n_pad
    if n_pad > 2048:
        tn = 128
        for cand in range(2048, 127, -128):
            if n_pad % cand == 0:
                tn = cand
                break
    n_tiles = n_pad // tn

    # Row tile: as large as requested, but keep >= 2 grid steps so the
    # "parallel" axes can shard across v7x's two TensorCores. Rows are padded
    # so any N works (padding sliced off afterwards).
    tm_eff = min(tm, max(_round_up(pl.cdiv(N, 2), 8), 8))
    m_pad = _round_up(N, tm_eff)
    if m_pad != N:
        x2 = jnp.pad(x2, ((0, m_pad - N), (0, 0)))
    m_tiles = m_pad // tm_eff
    grid = (m_tiles, n_tiles)

    # VMEM budget: double-buffered x/out/weight/bias tiles + headroom.
    # Cap at 64 MiB (v7x physical VMEM per TensorCore).
    # TODO(synk): for huge in_dim (K tens of thousands) add a K grid axis with
    # a VMEM f32 accumulator instead of keeping the full K resident per tile.
    bpe_in = jnp.dtype(x2.dtype).itemsize
    bpe_out = jnp.dtype(out_dtype).itemsize
    vmem_bytes = (2 * tm_eff * k_pad * bpe_in
                  + 2 * tm_eff * tn * bpe_out
                  + 2 * k_pad * tn * bpe_in
                  + 2 * tn * 4
                  + (1 << 20))
    vmem_bytes = int(min(max(vmem_bytes, 4 << 20), 64 << 20))

    out = pl.pallas_call(
        _siren_kernel,
        out_shape=jax.ShapeDtypeStruct((m_pad, n_pad), out_dtype),
        grid_spec=pltpu.PrefetchScalarGridSpec(
            num_scalar_prefetch=0,
            grid=grid,
            in_specs=[
                pl.BlockSpec((tm_eff, k_pad), lambda i, j: (i, 0)),  # x row tile
                pl.BlockSpec((k_pad, tn), lambda i, j: (0, j)),      # W^T col tile
                pl.BlockSpec((1, tn), lambda i, j: (0, j)),          # bias tile
            ],
            out_specs=pl.BlockSpec((tm_eff, tn), lambda i, j: (i, j)),
        ),
        compiler_params=pltpu.CompilerParams(
            dimension_semantics=("parallel", "parallel"),
            vmem_limit_bytes=vmem_bytes,
        ),
    )(x2, wt, b2)

    out = out[:N, :out_dim]
    return out.reshape(orig_shape[:-1] + (out_dim,))


if __name__ == "__main__":
    # SIRENLayer(in_dim=64, out_dim=64) on a small coordinate batch; N is
    # deliberately NOT a multiple of 8/128 to exercise the padded-tail path.
    N, in_dim, out_dim = 200, 64, 64
    w0 = 30.0

    key = jax.random.PRNGKey(0)
    kx, kw, kb = jax.random.split(key, 3)

    x = jax.random.normal(kx, (N, in_dim), dtype=jnp.float32)
    # torch.nn.init.uniform_(weight, -1/in_dim, 1/in_dim)
    weight = jax.random.uniform(
        kw, (out_dim, in_dim), dtype=jnp.float32,
        minval=-1.0 / in_dim, maxval=1.0 / in_dim)
    # torch.nn.Linear default bias init: U(-1/sqrt(in_dim), 1/sqrt(in_dim))
    bound = 1.0 / float(in_dim) ** 0.5
    bias = jax.random.uniform(
        kb, (out_dim,), dtype=jnp.float32, minval=-bound, maxval=bound)

    out = siren_layer(x, weight, bias, w0=w0)
    out = jax.block_until_ready(out)

    # Reference: same math as torch.sin(w0 * linear(x))
    ref = jnp.sin(w0 * (x @ weight.T + bias))
    assert out.shape == (N, out_dim)
    assert jnp.allclose(out, ref, atol=1e-4, rtol=1e-4), \
        float(jnp.max(jnp.abs(out - ref)))

    # Also exercise the batched (leading-dims) path like nn.Linear.
    xb = x.reshape(4, 50, in_dim)
    outb = jax.block_until_ready(siren_layer(xb, weight, bias, w0=w0))
    assert outb.shape == (4, 50, out_dim)
    assert jnp.allclose(outb.reshape(N, out_dim), ref, atol=1e-4, rtol=1e-4)

    print("KERNEL_OK")
</pallas_src>

<mosaic_0001>
module attributes {stable_mosaic.version = 11 : i64} {
  func.func @_siren_kernel(%arg0: i32, %arg1: i32, %arg2: memref<104x128xf32, #tpu.memory_space<vmem>>, %arg3: memref<128x128xf32, #tpu.memory_space<vmem>>, %arg4: memref<1x128xf32, #tpu.memory_space<vmem>>, %arg5: memref<104x128xf32, #tpu.memory_space<vmem>>) attributes {dimension_semantics = [#tpu.dimension_semantics<parallel>, #tpu.dimension_semantics<parallel>], iteration_bounds = array<i64: 2, 1>, scalar_prefetch = 0 : i64, scratch_operands = 0 : i64, tpu.core_type = #tpu.core_type<tc>, window_params = [{transform_indices = @transform_0, window_bounds = array<i64: 104, 128>}, {transform_indices = @transform_1, window_bounds = array<i64: 128, 128>}, {transform_indices = @transform_2, window_bounds = array<i64: 1, 128>}, {transform_indices = @transform_3, window_bounds = array<i64: 104, 128>}]} {
    %c0 = arith.constant 0 : index
    %c0_0 = arith.constant 0 : index
    %0 = vector.load %arg2[%c0, %c0_0] : memref<104x128xf32, #tpu.memory_space<vmem>>, vector<104x128xf32>
    %c0_1 = arith.constant 0 : index
    %c0_2 = arith.constant 0 : index
    %1 = vector.load %arg3[%c0_1, %c0_2] : memref<128x128xf32, #tpu.memory_space<vmem>>, vector<128x128xf32>
    %cst = arith.constant dense<0.000000e+00> : vector<104x128xf32>
    %2 = tpu.matmul %0, %1, %cst {dimension_numbers = #tpu.dot_dimension_numbers<[1], [0], [0], [1], [0, 0, 1, 1], [], []>} : vector<104x128xf32>, vector<128x128xf32>, vector<104x128xf32> -> vector<104x128xf32>
    %c0_3 = arith.constant 0 : index
    %c0_4 = arith.constant 0 : index
    %3 = vector.load %arg4[%c0_3, %c0_4] : memref<1x128xf32, #tpu.memory_space<vmem>>, vector<1x128xf32>
    %4 = vector.broadcast %3 : vector<1x128xf32> to vector<104x128xf32>
    %5 = arith.addf %2, %4 : vector<104x128xf32>
    %6 = math.sin %5 : vector<104x128xf32>
    %c0_5 = arith.constant 0 : index
    %c0_6 = arith.constant 0 : index
    %7 = vector.load %arg5[%c0_5, %c0_6] : memref<104x128xf32, #tpu.memory_space<vmem>>, vector<104x128xf32>
    tpu.vector_store %arg5[%c0_5, %c0_6], %6 {strides = array<i32>} : memref<104x128xf32, #tpu.memory_space<vmem>>, vector<104x128xf32>,
    return
  }
  func.func @transform_0(%arg0: i32, %arg1: i32) -> (i32, i32) {
    %c0_i32 = arith.constant 0 : i32
    %c0_i32_0 = arith.constant 0 : i32
    return %arg0, %c0_i32 : i32, i32
  }
  func.func @transform_1(%arg0: i32, %arg1: i32) -> (i32, i32) {
    %c0_i32 = arith.constant 0 : i32
    %c0_i32_0 = arith.constant 0 : i32
    return %c0_i32, %arg1 : i32, i32
  }
  func.func @transform_2(%arg0: i32, %arg1: i32) -> (i32, i32) {
    %c0_i32 = arith.constant 0 : i32
    %c0_i32_0 = arith.constant 0 : i32
    return %c0_i32, %arg1 : i32, i32
  }
  func.func @transform_3(%arg0: i32, %arg1: i32) -> (i32, i32) {
    %c0_i32 = arith.constant 0 : i32
    return %arg0, %arg1 : i32, i32
  }
}

</mosaic_0001>

<bundles_post_ra>
// kernel: siren_layer.1
= control target key start
LH: loop header
LB: loop body
LE: loop exit
PB: predicated region body
PF: predicated region fallthrough
CT: control target
= control target key end

     0   :  { %s2253_s12 = smov 0   ;;  %s2255_s13 = smov 0   ;;  %s3421_s0 = inlined_call_operand.vmem [shape: f32[208,128], index: 0, kind: input, shape index: {}]   ;;  %s3422_s1 = inlined_call_operand.vmem [shape: f32[128,128], index: 1, kind: input, shape index: {}]   ;;  %s3423_s2 = inlined_call_operand.vmem [shape: f32[1,128], index: 2, kind: input, shape index: {}]   ;;  %s3424_s3 = inlined_call_operand.vmem [shape: f32[208,128], index: 3, kind: output, shape index: {}]  }
   0x1   :  { %s2257_s14 = smov 0  }
   0x2 LB: > { %s25_s15 = sadd.s32 1, %s2218_s13  ;;  %p1864_p0 = scmp.ge.s32.totalorder %s2222_s14, 1  ;;  %s2222_s14 = sphi %s2257_s14, %s13_s14   ;;  %s2218_s13 = sphi %s2255_s13, %s3448_s13   ;;  %s2214_s12 = sphi %s2253_s12, %s3447_s12  }
   0x3   : > { %p27_p1 = scmp.ge.s32.totalorder %s25_s15, 2  ;;  %p169_p2 = scmp.lt.s32.totalorder %s2222_s14, 3 }
   0x5   : > { %s3450_s15 = smov (%p27_p1, %s25_s15), 0  ;;  %p170_p3 = pnand %p1864_p0, %p169_p2 }
   0x6   : > { %v238_v0 = vld [vmem:[%s3422_s1] sm:$0xff] (!%p170_p3)  ;;  %v239_v1 = vld [vmem:[%s3422_s1 + $0x8] sm:$0xff] (!%p170_p3)  ;;  %v240_v2 = vld [vmem:[%s3422_s1 + $0x10] sm:$0xff] (!%p170_p3)  ;;  %v2224_v3 = vmov (!%p170_p3), 0.0|0.0   ;;  %vm2225_vm0 = vmmov (!%p170_p3), 0   ;;  %v2226_v6 = vmov (!%p170_p3), 0.0  }
   0x7   : > { %173 = sbr.rel (%p170_p3) target bundleno = 612 (0x264), region = 32  ;;  %2022 = vmatprep.subr.bf16.mxu0 (!%p170_p3), %v2224_v3  ;;  %2046 = vmatprep.subr.bf16.mxu1 (!%p170_p3), %v2224_v3  ;;  %v2023_v4 = vpack.c.bf16 (!%p170_p3), %v239_v1, %v238_v0  ;;  %v241_v5 = vld [vmem:[%s3422_s1 + $0x18] sm:$0xff] (!%p170_p3)  ;;  %v242_v8 = vld [vmem:[%s3422_s1 + $0x20] sm:$0xff] (!%p170_p3)  ;;  %v243_v9 = vld [vmem:[%s3422_s1 + $0x28] sm:$0xff] (!%p170_p3) }
   0x8   : > { %1983 = vmatprep.mubr.msk.f32.mxu0 (!%p170_p3), %vm2225_vm0, %v2226_v6  ;;  %2004 = vmatprep.mubr.msk.f32.mxu1 (!%p170_p3), %vm2225_vm0, %v2226_v6  ;;  %v2026_v7 = vpack.c.bf16 (!%p170_p3), %v241_v5, %v240_v2  ;;  %v2029_v10 = vpack.c.bf16 (!%p170_p3), %v243_v9, %v242_v8  ;;  %v244_v11 = vld [vmem:[%s3422_s1 + $0x30] sm:$0xff] (!%p170_p3)  ;;  %v245_v12 = vld [vmem:[%s3422_s1 + $0x38] sm:$0xff] (!%p170_p3)  ;;  %v246_v14 = vld [vmem:[%s3422_s1 + $0x40] sm:$0xff] (!%p170_p3)  ;;  %s203_s9 = smul.u32 (!%p170_p3), 13, %s2214_s12 }
   0x9   : > { %2024 = vmatpush3.bf16.msra.mxu0 (!%p170_p3), %v2023_v4  ;;  %2054 = vmatpush3.bf16.msra.mxu1 (!%p170_p3), %v2023_v4  ;;  %v2032_v13 = vpack.c.bf16 (!%p170_p3), %v245_v12, %v244_v11  ;;  %v247_v15 = vld [vmem:[%s3422_s1 + $0x48] sm:$0xff] (!%p170_p3)  ;;  %v248_v17 = vld [vmem:[%s3422_s1 + $0x50] sm:$0xff] (!%p170_p3)  ;;  %v249_v18 = vld [vmem:[%s3422_s1 + $0x58] sm:$0xff] (!%p170_p3) }
   0xa   : > { %2025 = vmatprep.subr.bf16.mxu0 (!%p170_p3), %v2224_v3  ;;  %2047 = vmatprep.subr.bf16.mxu1 (!%p170_p3), %v2224_v3  ;;  %v2035_v16 = vpack.c.bf16 (!%p170_p3), %v247_v15, %v246_v14  ;;  %p204_p4 = scmp.lt.s32.totalorder (!%p170_p3), %s203_s9, 25  ;;  %v2038_v19 = vpack.c.bf16 (!%p170_p3), %v249_v18, %v248_v17  ;;  %v250_v20 = vld [vmem:[%s3422_s1 + $0x60] sm:$0xff] (!%p170_p3)  ;;  %v251_v21 = vld [vmem:[%s3422_s1 + $0x68] sm:$0xff] (!%p170_p3)  ;;  %v252_v23 = vld [vmem:[%s3422_s1 + $0x70] sm:$0xff] (!%p170_p3) }
   0xb   : > { %v2041_v22 = vpack.c.bf16 (!%p170_p3), %v251_v21, %v250_v20  ;;  %v253_v24 = vld [vmem:[%s3422_s1 + $0x78] sm:$0xff] (!%p170_p3)  ;;  %v2374_v39 = vld [vmem:[%s3423_s2] ss:$0 sm:$0xff] (!%p170_p3) }
   0xc   : > { %v2044_v25 = vpack.c.bf16 (!%p170_p3), %v253_v24, %v252_v23  ;;  %v2227_v23 = vmov (!%p170_p3), 683565275  }
   0xd   : > { %2027 = vmatpush3.bf16.msra.mxu0 (!%p170_p3), %v2026_v7  ;;  %2055 = vmatpush3.bf16.msra.mxu1 (!%p170_p3), %v2026_v7 }
   0xe   : > { %2028 = vmatprep.subr.bf16.mxu0 %v2224_v3  ;;  %2048 = vmatprep.subr.bf16.mxu1 %v2224_v3  ;;  %s3452_s9 = smov (!%p204_p4, %s203_s9), 25 }
   0xf   : > { %s1865_s25 = sshll.u32 %s3452_s9, 3 }
  0x10   : > { %s2334_s28 = scalar_lea.vmem %s3421_s0, %s1865_s25  ;;  %s2674_s6 = scalar_lea.vmem %s3424_s3, %s1865_s25 }
  0x11   : > { %2030 = vmatpush3.bf16.msra.mxu0 %v2029_v10  ;;  %2056 = vmatpush3.bf16.msra.mxu1 %v2029_v10  ;;  %v225_v26 = vld [vmem:[%s2334_s28] sm:$0xff]  ;;  %v232_v27 = vld [vmem:[%s2334_s28 + $0x38] sm:$0xff]  ;;  %v226_v28 = vld [vmem:[%s2334_s28 + $0x8] sm:$0xff] }
  0x12   : > { %2031 = vmatprep.subr.bf16.mxu0 %v2224_v3  ;;  %2049 = vmatprep.subr.bf16.mxu1 %v2224_v3  ;;  %v233_v29 = vld [vmem:[%s2334_s28 + $0x40] sm:$0xff]  ;;  %v227_v30 = vld [vmem:[%s2334_s28 + $0x10] sm:$0xff]  ;;  %v234_v31 = vld [vmem:[%s2334_s28 + $0x48] sm:$0xff] }
  0x13   : > { %v228_v32 = vld [vmem:[%s2334_s28 + $0x18] sm:$0xff]  ;;  %v235_v33 = vld [vmem:[%s2334_s28 + $0x50] sm:$0xff]  ;;  %v229_v34 = vld [vmem:[%s2334_s28 + $0x20] sm:$0xff] }
  0x14   : > { %v236_v35 = vld [vmem:[%s2334_s28 + $0x58] sm:$0xff]  ;;  %v230_v36 = vld [vmem:[%s2334_s28 + $0x28] sm:$0xff]  ;;  %v237_v37 = vld [vmem:[%s2334_s28 + $0x60] sm:$0xff] }
  0x15   : > { %2033 = vmatpush3.bf16.msra.mxu0 %v2032_v13  ;;  %2057 = vmatpush3.bf16.msra.mxu1 %v2032_v13  ;;  %v231_v38 = vld [vmem:[%s2334_s28 + $0x30] sm:$0xff] }
  0x16   : > { %2034 = vmatprep.subr.bf16.mxu0 %v2224_v3  ;;  %2050 = vmatprep.subr.bf16.mxu1 %v2224_v3 }
  0x19   : > { %2036 = vmatpush3.bf16.msra.mxu0 %v2035_v16  ;;  %2058 = vmatpush3.bf16.msra.mxu1 %v2035_v16 }
  0x1a   : > { %2037 = vmatprep.subr.bf16.mxu0 %v2224_v3  ;;  %2051 = vmatprep.subr.bf16.mxu1 %v2224_v3 }
  0x1d   : > { %2039 = vmatpush3.bf16.msra.mxu0 %v2038_v19  ;;  %2059 = vmatpush3.bf16.msra.mxu1 %v2038_v19 }
  0x1e   : > { %2040 = vmatprep.subr.bf16.mxu0 %v2224_v3  ;;  %2052 = vmatprep.subr.bf16.mxu1 %v2224_v3 }
  0x21   : > { %2042 = vmatpush3.bf16.msra.mxu0 %v2041_v22  ;;  %2060 = vmatpush3.bf16.msra.mxu1 %v2041_v22 }
  0x22   : > { %2043 = vmatprep.subr.bf16.mxu0 %v2224_v3  ;;  %2053 = vmatprep.subr.bf16.mxu1 %v2224_v3 }
  0x25   : > { %2045 = vmatpush3.bf16.msra.mxu0 %v2044_v25  ;;  %2061 = vmatpush3.bf16.msra.mxu1 %v2044_v25 }
  0x28   : > { %1984 = vmatmul.mubr.f32.vlgmr.msra.gmra.mrb[0].mxu0 %v225_v26  ;;  %2005 = vmatmul.mubr.f32.vlgmr.msra.gmra.mrb[0].mxu1 %v232_v27  ;;  %v2228_v27 = vmov 2475754826  }
  0x29   : > { %1986 = vmatprep.mubr.msk.f32.mxu0 %vm2225_vm0, %v2226_v6  ;;  %2007 = vmatprep.mubr.msk.f32.mxu1 %vm2225_vm0, %v2226_v6 }
  0x2c   : > { %1987 = vmatmul.mubr.f32.gmra.mrb[2].mxu0 %v226_v28  ;;  %2008 = vmatmul.mubr.f32.gmra.mrb[2].mxu1 %v233_v29  ;;  %v2229_v29 = vmov 2131351028  }
  0x2d   : > { %1989 = vmatprep.mubr.msk.f32.mxu0 %vm2225_vm0, %v2226_v6  ;;  %2010 = vmatprep.mubr.msk.f32.mxu1 %vm2225_vm0, %v2226_v6 }
  0x30   : > { %1990 = vmatmul.mubr.f32.gmra.mrb[4].mxu0 %v227_v30  ;;  %2011 = vmatmul.mubr.f32.gmra.mrb[4].mxu1 %v234_v31  ;;  %v2230_v31 = vmov 2102212464  }
  0x31   : > { %1992 = vmatprep.mubr.msk.f32.mxu0 %vm2225_vm0, %v2226_v6  ;;  %2013 = vmatprep.mubr.msk.f32.mxu1 %vm2225_vm0, %v2226_v6 }
  0x34   : > { %1993 = vmatmul.mubr.f32.gmra.mrb[6].mxu0 %v228_v32  ;;  %2014 = vmatmul.mubr.f32.gmra.mrb[6].mxu1 %v235_v33  ;;  %v2231_v33 = vmov 920167782  }
  0x35   : > { %1995 = vmatprep.mubr.msk.f32.mxu0 %vm2225_vm0, %v2226_v6  ;;  %2016 = vmatprep.mubr.msk.f32.mxu1 %vm2225_vm0, %v2226_v6 }
  0x38   : > { %1996 = vmatmul.mubr.f32.gmra.mrb[8].mxu0 %v229_v34  ;;  %2017 = vmatmul.mubr.f32.gmra.mrb[8].mxu1 %v236_v35 }
  0x39   : > { %1998 = vmatprep.mubr.msk.f32.mxu0 %vm2225_vm0, %v2226_v6  ;;  %2019 = vmatprep.mubr.msk.f32.mxu1 %vm2225_vm0, %v2226_v6 }
  0x3c   : > { %1999 = vmatmul.mubr.f32.gmra.mrb[10].mxu0 %v230_v36  ;;  %2020 = vmatmul.mubr.f32.gmra.mrb[10].mxu1 %v237_v37 }
  0x3d   : > { %2001 = vmatprep.mubr.msk.f32.mxu0 %vm2225_vm0, %v2226_v6 }
  0x40   : > { %2002 = vmatmul.mubr.f32.gmra.mrb[12].mxu0 %v231_v38 }
  0xfb   : > { %v327_v40 = vpop.f32.mrb[0].mxu0  ;;  %v362_v41 = vpop.f32.mrb[0].mxu1 }
  0xfc   : > { %v2377_v42 = vadd.f32 %v2374_v39, %v327_v40  ;;  %v2380_v43 = vadd.f32 %v2374_v39, %v362_v41  ;;  %v1985_v44 = vpop.f32.mrb[1].mxu0  ;;  %v2006_v45 = vpop.f32.mrb[1].mxu1  ;;  %v2232_v41 = vmov 1326507024  }
  0xfe   : > { %v391_v46 = vand.u32 2147483647, %v2377_v42  ;;  %v394_v47 = vand.u32 2139095040, %v2377_v42  ;;  %v1119_v48 = vand.u32 2147483647, %v2380_v43  ;;  %v1122_v49 = vand.u32 2139095040, %v2380_v43 }
  0xff   : > { %v332_v50 = vpop.f32.mrb[2].mxu0  ;;  %v367_v51 = vpop.f32.mrb[2].mxu1  ;;  %vm393_vm14 = vcmp.lt.s32.totalorder %v2377_v42, 0 }
 0x100   : > { %v395_v52 = vshrl.u32 %v394_v47, 23  ;;  %v398_v53 = vand.u32 8388607, %v391_v46  ;;  %v2389_v54 = vadd.f32 %v2374_v39, %v332_v50  ;;  %v1988_v55 = vpop.f32.mrb[3].mxu0  ;;  %v1123_v56 = vshrl.u32 %v1122_v49, 23  ;;  %v2009_v58 = vpop.f32.mrb[3].mxu1 }
 0x101   : > { %v1126_v57 = vand.u32 8388607, %v1119_v48  ;;  %v2402_v14 = vadd.f32 %v2374_v39, %v367_v51  ;;  %vm2511_vm15 = vcmp.le.f32.partialorder %v391_v46, 0.7853982 }
 0x102   : > { %v1868_v59 = vadd.s32 4294967169, %v395_v52  ;;  %v1896_v60 = vadd.s32 4294967169, %v1123_v56  ;;  %v498_v61 = vand.u32 2139095040, %v2389_v54  ;;  %v399_v0 = vor.u32 8388608, %v398_v53 }
 0x103   : > { %v2394_v62 = vpop.f32.mrb[4].mxu0  ;;  %v2396_v63 = vpop.f32.mrb[4].mxu1  ;;  %v1127_v2 = vor.u32 8388608, %v1126_v57  ;;  %v495_v4 = vand.u32 2147483647, %v2389_v54 }
 0x104   : > { %v401_v1 = vadd.s32 1, %v1868_v59  ;;  %v1129_v3 = vadd.s32 1, %v1896_v60  ;;  %v499_v5 = vshrl.u32 %v498_v61, 23  ;;  %v1991_v6 = vpop.f32.mrb[5].mxu0  ;;  %v2012_v7 = vpop.f32.mrb[5].mxu1  ;;  %v2406_v17 = vshll.u32 %v399_v0, 8 }
 0x105   : > { %v2410_v19 = vshll.u32 %v1127_v2, 8  ;;  %v2414_v20 = vand.u32 8388607, %v495_v4 }
 0x106   : > { %vm402_vm1 = vcmp.gt.s32.totalorder %v401_v1, 0  ;;  %vm1130_vm2 = vcmp.gt.s32.totalorder %v1129_v3, 0  ;;  %v1872_v9 = vadd.s32 4294967169, %v499_v5 }
 0x107   : > { %v403_v8 = vsel %vm402_vm1, %v401_v1, 0  ;;  %v2399_v10 = vpop.f32.mrb[6].mxu0  ;;  %v1131_v13 = vsel %vm1130_vm2, %v1129_v3, 0  ;;  %v2404_v15 = vpop.f32.mrb[6].mxu1 }
 0x108   : > { %v404_v11 = vshrl.u32 %v403_v8, 5  ;;  %v405_v12 = vand.u32 31, %v403_v8  ;;  %v1994_v16 = vpop.f32.mrb[7].mxu0  ;;  %v2408_v18 = vshrl.u32 %v1131_v13, 5  ;;  %v2015_v21 = vpop.f32.mrb[7].mxu1  ;;  %v1133_v25 = vand.u32 31, %v1131_v13 }
 0x109   : > { %v2417_v26 = vadd.s32 1, %v1872_v9 }
 0x10a   : > { %v406_v22 = vsub.s32 32, %v405_v12  ;;  %v408_v24 = vshll.u32 %v2227_v23, %v405_v12  ;;  %v411_v28 = vshll.u32 %v2228_v27, %v405_v12  ;;  %v414_v30 = vshll.u32 %v2229_v29, %v405_v12 }
 0x10b   : > { %v417_v32 = vshll.u32 %v2230_v31, %v405_v12  ;;  %v420_v34 = vshll.u32 %v2231_v33, %v405_v12  ;;  %vm423_vm3 = vcmp.lt.s32.totalorder %v404_v11, 1  ;;  %vm425_vm4 = vcmp.lt.s32.totalorder %v404_v11, 3 }
 0x10c   : > { %v409_v35 = vshrl.u32 %v2228_v27, %v406_v22  ;;  %v412_v36 = vshrl.u32 %v2229_v29, %v406_v22  ;;  %v415_v37 = vshrl.u32 %v2230_v31, %v406_v22  ;;  %v407_v38 = vshrl.u32 %v2227_v23, %v406_v22 }
 0x10d   : > { %v418_v40 = vshrl.u32 %v2231_v33, %v406_v22  ;;  %v421_v44 = vshrl.u32 %v2232_v41, %v406_v22  ;;  %v1134_v50 = vsub.s32 32, %v1133_v25  ;;  %vm426_vm5 = vcmp.lt.s32.totalorder %v404_v11, 4 }
 0x10e   : > { %v410_v45 = vor.u32 %v409_v35, %v408_v24  ;;  %v413_v47 = vor.u32 %v412_v36, %v411_v28  ;;  %v416_v49 = vor.u32 %v415_v37, %v414_v30  ;;  %v1136_v53 = vshll.u32 %v2227_v23, %v1133_v25 }
 0x10f   : > { %v419_v51 = vor.u32 %v418_v40, %v417_v32  ;;  %v422_v52 = vor.u32 %v421_v44, %v420_v34  ;;  %v1139_v0 = vshll.u32 %v2228_v27, %v1133_v25  ;;  %vm424_vm6 = vcmp.lt.s32.totalorder %v404_v11, 2 }
 0x110   : > { %v427_v55 = vsel %vm423_vm3, %v407_v38, %v410_v45  ;;  %v428_v56 = vsel %vm426_vm5, %v416_v49, 2102212464  ;;  %v431_v57 = vsel %vm423_vm3, %v410_v45, %v413_v47  ;;  %v435_v58 = vsel %vm423_vm3, %v413_v47, %v416_v49 }
 0x111   : > { %v429_v59 = vsel %vm425_vm4, %v413_v47, %v428_v56  ;;  %v432_v60 = vsel %vm426_vm5, %v419_v51, 920167782  ;;  %v436_v61 = vsel %vm426_vm5, %v422_v52, 1326507024  ;;  %v1137_v3 = vshrl.u32 %v2228_v27, %v1134_v50 }
 0x112   : > { %v433_v1 = vsel %vm425_vm4, %v416_v49, %v432_v60  ;;  %v437_v2 = vsel %vm425_vm4, %v419_v51, %v436_v61  ;;  %v430_v5 = vsel %vm424_vm6, %v427_v55, %v429_v59  ;;  %v1140_v8 = vshrl.u32 %v2229_v29, %v1134_v50 }
 0x113   : > { %v434_v6 = vsel %vm424_vm6, %v431_v57, %v433_v1  ;;  %v438_v7 = vsel %vm424_vm6, %v435_v58, %v437_v2  ;;  %v1138_v21 = vor.u32 %v1137_v3, %v1136_v53  ;;  %v1142_v11 = vshll.u32 %v2229_v29, %v1133_v25  ;;  %v2477_v3 = vpop.f32.mrb[8].mxu0 }
 0x114   : > { %v2440_v9 = vmul.u32.u64.low %v2406_v17, %v438_v7  ;;  %v2441_v12 = vmul.u32.u64.high %v2406_v17, %v438_v7, %v2440_v9  ;;  %v2444_v13 = vmul.u32.u64.low %v2406_v17, %v434_v6  ;;  %v2445_v16 = vmul.u32.u64.high %v2406_v17, %v434_v6, %v2444_v13 }
 0x115   : > { %v1141_v22 = vor.u32 %v1140_v8, %v1139_v0  ;;  %v1143_v24 = vshrl.u32 %v2230_v31, %v1134_v50  ;;  %v1145_v28 = vshll.u32 %v2230_v31, %v1133_v25  ;;  %v1146_v30 = vshrl.u32 %v2231_v33, %v1134_v50  ;;  %v1997_v9 = vpop.f32.mrb[9].mxu0 }
 0x116   : > { %v1148_v32 = vshll.u32 %v2231_v33, %v1133_v25  ;;  %v1149_v34 = vshrl.u32 %v2232_v41, %v1134_v50  ;;  %v446_v35 = vmul.u32 %v2406_v17, %v430_v5  ;;  %v1135_v36 = vshrl.u32 %v2227_v23, %v1134_v50 }
 0x117   : > { %v1144_v37 = vor.u32 %v1143_v24, %v1142_v11  ;;  %vm1151_vm7 = vcmp.lt.s32.totalorder %v2408_v18, 1  ;;  %vm448_vm8 = vc.u32 %v2441_v12, %v2444_v13  ;;  %v449_v38 = vadd.s32 1, %v2445_v16 }
 0x118   : > { %v1147_v40 = vor.u32 %v1146_v30, %v1145_v28  ;;  %vm1152_vm9 = vcmp.lt.s32.totalorder %v2408_v18, 2  ;;  %v1150_v44 = vor.u32 %v1149_v34, %v1148_v32  ;;  %vm1153_vm10 = vcmp.lt.s32.totalorder %v2408_v18, 3 }
 0x119   : > { %vm1154_vm11 = vcmp.lt.s32.totalorder %v2408_v18, 4  ;;  %v1159_v25 = vsel %vm1151_vm7, %v1138_v21, %v1141_v22  ;;  %v450_v17 = vsel %vm448_vm8, %v449_v38, %v2445_v16  ;;  %v1163_v49 = vsel %vm1151_vm7, %v1141_v22, %v1144_v37 }
 0x11a   : > { %v1156_v45 = vsel %vm1154_vm11, %v1144_v37, 2102212464  ;;  %v1160_v47 = vsel %vm1154_vm11, %v1147_v40, 920167782  ;;  %v451_v50 = vadd.s32 %v450_v17, %v446_v35  ;;  %v1155_v51 = vsel %vm1151_vm7, %v1135_v36, %v1138_v21 }
 0x11b   : > { %v1161_v52 = vsel %vm1153_vm10, %v1144_v37, %v1160_v47  ;;  %v1164_v53 = vsel %vm1154_vm11, %v1150_v44, 1326507024  ;;  %v1157_v55 = vsel %vm1153_vm10, %v1141_v22, %v1156_v45  ;;  %vm506_vm12 = vcmp.gt.s32.totalorder %v2417_v26, 0 }
 0x11c   : > { %v1162_v56 = vsel %vm1152_vm9, %v1159_v25, %v1161_v52  ;;  %v1165_v57 = vsel %vm1153_vm10, %v1147_v40, %v1164_v53  ;;  %v452_v58 = vadd.s32 536870912, %v451_v50  ;;  %v507_v2 = vsel %vm506_vm12, %v2417_v26, 0 }
 0x11d   : > { %v1166_v59 = vsel %vm1152_vm9, %v1163_v49, %v1165_v57  ;;  %v2468_v60 = vmul.u32.u64.low %v2410_v19, %v1162_v56  ;;  %v2469_v61 = vmul.u32.u64.high %v2410_v19, %v1162_v56, %v2468_v60  ;;  %v1158_v6 = vsel %vm1152_vm9, %v1155_v51, %v1157_v55 }
 0x11e   : > { %v2473_v0 = vmul.u32.u64.low %v2410_v19, %v1166_v59  ;;  %v2474_v1 = vmul.u32.u64.high %v2410_v19, %v1166_v59, %v2473_v0  ;;  %v453_v5 = vshrl.u32 %v452_v58, 30  ;;  %v509_v7 = vand.u32 31, %v507_v2 }
 0x11f   : > { %v1226_v8 = vand.u32 2139095040, %v2402_v14  ;;  %v1177_v21 = vadd.s32 1, %v2469_v61  ;;  %v503_v22 = vor.u32 8388608, %v2414_v20  ;;  %v1174_v11 = vmul.u32 %v2410_v19, %v1158_v6 }
 0x120   : > { %v454_v16 = vshll.u32 %v453_v5, 30  ;;  %vm1176_vm13 = vc.u32 %v2474_v1, %v2468_v60  ;;  %v510_v26 = vsub.s32 32, %v509_v7  ;;  %v447_v32 = vadd.s32 %v2444_v13, %v2441_v12 }
 0x121   : > { %v1178_v18 = vsel %vm1176_vm13, %v1177_v21, %v2469_v61  ;;  %v1227_v28 = vshrl.u32 %v1226_v8, 23  ;;  %v2493_v35 = vshll.u32 %v503_v22, 8  ;;  %v1223_v19 = vand.u32 2147483647, %v2402_v14 }
 0x122   : > { %v2487_v24 = vsub.s32 %v451_v50, %v454_v16  ;;  %v1179_v30 = vadd.s32 %v1178_v18, %v1174_v11  ;;  %v2496_v36 = vshrl.u32 %v507_v2, 5  ;;  %v513_v37 = vshrl.u32 %v2228_v27, %v510_v26 }
 0x123   : > { %v516_v38 = vshrl.u32 %v2229_v29, %v510_v26  ;;  %v519_v44 = vshrl.u32 %v2230_v31, %v510_v26  ;;  %v522_v25 = vshrl.u32 %v2231_v33, %v510_v26  ;;  %v2503_v12 = vadd.s32 4294967169, %v1227_v28 }
 0x124   : > { %v457_v34 = vsub.s32 0, %v2487_v24  ;;  %v1180_v20 = vadd.s32 536870912, %v1179_v30  ;;  %v477_v13 = vsub.s32 4, %v453_v5  ;;  %v512_v45 = vshll.u32 %v2227_v23, %v509_v7 }
 0x125   : > { %v515_v47 = vshll.u32 %v2228_v27, %v509_v7  ;;  %v518_v51 = vshll.u32 %v2229_v29, %v509_v7  ;;  %v521_v52 = vshll.u32 %v2230_v31, %v509_v7  ;;  %v525_v53 = vshrl.u32 %v2232_v41, %v510_v26 }
 0x126   : > { %v1869_v40 = vmin.u32 %v457_v34, %v2487_v24  ;;  %v2505_v17 = vshrl.u32 %v1180_v20, 30  ;;  %v514_v56 = vor.u32 %v513_v37, %v512_v45  ;;  %v2521_v58 = vand.u32 8388607, %v1223_v19 }
 0x127   : > { %v517_v57 = vor.u32 %v516_v38, %v515_v47  ;;  %v520_v46 = vor.u32 %v519_v44, %v518_v51  ;;  %v523_v61 = vor.u32 %v522_v25, %v521_v52  ;;  %v524_v0 = vshll.u32 %v2231_v33, %v509_v7 }
 0x128   : > { %v459_v50 = vclz %v1869_v40  ;;  %v1182_v55 = vshll.u32 %v2505_v17, 30  ;;  %v478_v2 = vsel %vm393_vm14, %v477_v13, %v453_v5  ;;  %v511_v8 = vshrl.u32 %v2227_v23, %v510_v26 }
 0x129   : > { %vm527_vm0 = vcmp.lt.s32.totalorder %v2496_v36, 1  ;;  %v526_v9 = vor.u32 %v525_v53, %v524_v0  ;;  %vm528_vm2 = vcmp.lt.s32.totalorder %v2496_v36, 2  ;;  %vm529_vm3 = vcmp.lt.s32.totalorder %v2496_v36, 3 }
 0x12a   : > { %v1870_v59 = vadd.s32 4294967294, %v459_v50  ;;  %v2526_v6 = vsub.s32 %v1179_v30, %v1182_v55  ;;  %vm1121_vm4 = vcmp.lt.s32.totalorder %v2380_v43, 0  ;;  %vm530_vm5 = vcmp.lt.s32.totalorder %v2496_v36, 4 }
 0x12b   : > { %v535_v5 = vsel %vm527_vm0, %v514_v56, %v517_v57  ;;  %v532_v11 = vsel %vm530_vm5, %v520_v46, 2102212464  ;;  %v536_v26 = vsel %vm530_vm5, %v523_v61, 920167782  ;;  %v539_v34 = vsel %vm527_vm0, %v517_v57, %v520_v46 }
 0x12c   : > { %vm1871_vm1 = vcmp.lt.s32.totalorder %v1870_v59, 0  ;;  %v1185_v7 = vsub.s32 0, %v2526_v6  ;;  %v537_v30 = vsel %vm529_vm3, %v520_v46, %v536_v26  ;;  %v540_v40 = vsel %vm530_vm5, %v526_v9, 1326507024 }
 0x12d   : > { %v462_v16 = vsel %vm1871_vm1, 0, %v1870_v59  ;;  %v538_v38 = vsel %vm528_vm2, %v535_v5, %v537_v30  ;;  %v480_v44 = vsel %vm2511_vm15, 0, %v478_v2  ;;  %vm2549_vm6 = vcmp.le.f32.partialorder %v1119_v48, 0.7853982 }
 0x12e   : > { %v463_v21 = vsub.s32 32, %v462_v16  ;;  %v467_v22 = vsub.s32 4294967266, %v462_v16  ;;  %v464_v18 = vshll.u32 %v2487_v24, %v462_v16  ;;  %v1897_v28 = vmin.u32 %v1185_v7, %v2526_v6 }
 0x12f   : > { %v531_v13 = vsel %vm527_vm0, %v511_v8, %v514_v56  ;;  %v1205_v50 = vsub.s32 4, %v2505_v17  ;;  %v541_v51 = vsel %vm529_vm3, %v523_v61, %v540_v40  ;;  %v484_v0 = vadd.s32 3, %v480_v44 }
 0x130   : > { %v465_v20 = vshrl.u32 %v447_v32, %v463_v21  ;;  %v468_v37 = vadd.s32 127, %v467_v22  ;;  %v1187_v25 = vclz %v1897_v28  ;;  %v533_v32 = vsel %vm529_vm3, %v517_v57, %v532_v11  ;;  %v2581_v11 = vpop.f32.mrb[8].mxu1 }
 0x131   : > { %v542_v48 = vsel %vm528_vm2, %v539_v34, %v541_v51  ;;  %v2563_v53 = vmul.u32.u64.low %v2493_v35, %v538_v38  ;;  %v2564_v55 = vmul.u32.u64.high %v2493_v35, %v538_v38, %v2563_v53  ;;  %v534_v57 = vsel %vm528_vm2, %v531_v13, %v533_v32 }
 0x132   : > { %v466_v45 = vor.u32 %v465_v20, %v464_v18  ;;  %v469_v47 = vshll.u32 %v468_v37, 23  ;;  %v1898_v52 = vadd.s32 4294967294, %v1187_v25  ;;  %v1175_v61 = vadd.s32 %v2468_v60, %v2474_v1  ;;  %v2018_v1 = vpop.f32.mrb[9].mxu1 }
 0x133   : > { %v2570_v59 = vmul.u32.u64.low %v2493_v35, %v542_v48  ;;  %v2571_v46 = vmul.u32.u64.high %v2493_v35, %v542_v48, %v2570_v59  ;;  %v1233_v2 = vadd.s32 1, %v2503_v12  ;;  %v1206_v7 = vsel %vm1121_vm4, %v1205_v50, %v2505_v17 }
 0x134   : > { %v470_v56 = vor.u32 4788187, %v469_v47  ;;  %vm1899_vm7 = vcmp.lt.s32.totalorder %v1898_v52, 0  ;;  %v473_v9 = vcvt.s32.f32 %v466_v45  ;;  %v550_v21 = vmul.u32 %v2493_v35, %v534_v57 }
 0x135   : > { %v1190_v16 = vsel %vm1899_vm7, 0, %v1898_v52  ;;  %v553_v22 = vadd.s32 1, %v2564_v55  ;;  %vm552_vm8 = vc.u32 %v2571_v46, %v2563_v53  ;;  %vm1234_vm9 = vcmp.gt.s32.totalorder %v1233_v2, 0 }
 0x136   : > { %v471_v8 = vand.u32 2147483647, %v470_v56  ;;  %v1191_v36 = vsub.s32 32, %v1190_v16  ;;  %v1195_v5 = vsub.s32 4294967266, %v1190_v16  ;;  %v1192_v60 = vshll.u32 %v2526_v6, %v1190_v16 }
 0x137   : > { %v554_v17 = vsel %vm552_vm8, %v553_v22, %v2564_v55  ;;  %v1235_v28 = vsel %vm1234_vm9, %v1233_v2, 0  ;;  %v1208_v35 = vsel %vm2549_vm6, 0, %v1206_v7  ;;  %v2591_v6 = vadd.f32 %v2374_v39, %v2394_v62 }
 0x138   : > { %v474_v26 = vmul.f32 %v473_v9, %v471_v8  ;;  %v1193_v12 = vshrl.u32 %v1175_v61, %v1191_v36  ;;  %v1196_v18 = vadd.s32 127, %v1195_v5  ;;  %v555_v34 = vadd.s32 %v554_v17, %v550_v21 }
 0x139   : > { %v1237_v20 = vand.u32 31, %v1235_v28  ;;  %v2597_v13 = vadd.f32 %v2374_v39, %v2396_v63  ;;  %v2602_v45 = vand.u32 3, %v484_v0  ;;  %v1212_v50 = vadd.s32 3, %v1208_v35 }
 0x13a   : > { %v475_v30 = vxor.u32 2147483648, %v474_v26  ;;  %v1194_v37 = vor.u32 %v1193_v12, %v1192_v60  ;;  %v1197_v38 = vshll.u32 %v1196_v18, 23  ;;  %v556_v44 = vadd.s32 536870912, %v555_v34 }
 0x13b   : > { %v1238_v25 = vsub.s32 32, %v1237_v20  ;;  %vm497_vm10 = vcmp.lt.s32.totalorder %v2389_v54, 0  ;;  %v1231_v51 = vor.u32 8388608, %v2521_v58  ;;  %v1240_v52 = vshll.u32 %v2227_v23, %v1237_v20 }
 0x13c   : > { %v476_v40 = vsel %vm393_vm14, %v475_v30, %v474_v26  ;;  %v1198_v47 = vor.u32 4788187, %v1197_v38  ;;  %v557_v62 = vshrl.u32 %v556_v44, 30  ;;  %v1201_v63 = vcvt.s32.f32 %v1194_v37 }
 0x13d   : > { %v479_v32 = vsel %vm2511_vm15, %v2377_v42, %v476_v40  ;;  %v1243_v55 = vshll.u32 %v2228_v27, %v1237_v20  ;;  %vm2610_vm11 = vcmp.le.f32.partialorder %v495_v4, 0.7853982  ;;  %v1241_v57 = vshrl.u32 %v2228_v27, %v1238_v25 }
 0x13e   : > { %2147 = vcosq.f32 %v479_v32  ;;  %v1199_v48 = vand.u32 2147483647, %v1198_v47  ;;  %v558_v56 = vshll.u32 %v557_v62, 30  ;;  %v1244_v59 = vshrl.u32 %v2229_v29, %v1238_v25 }
 0x13f   : > { %2149 = vsinq.f32 %v479_v32  ;;  %v1246_v58 = vshll.u32 %v2229_v29, %v1237_v20  ;;  %v1247_v61 = vshrl.u32 %v2230_v31, %v1238_v25  ;;  %v1249_v2 = vshll.u32 %v2230_v31, %v1237_v20 }
 0x140   : > { %v1202_v0 = vmul.f32 %v1201_v63, %v1199_v48  ;;  %v1250_v8 = vshrl.u32 %v2231_v33, %v1238_v25  ;;  %vm490_vm12 = vcmp.eq.s32.totalorder %v2602_v45, 2  ;;  %v2621_v4 = vand.u32 3, %v1212_v50 }
 0x141   : > { %v2623_v9 = vsub.s32 %v555_v34, %v558_v56  ;;  %v581_v16 = vsub.s32 4, %v557_v62  ;;  %v2625_v7 = vshrl.u32 %v1235_v28, 5  ;;  %vm487_vm13 = vcmp.eq.s32.totalorder %v2602_v45, 0 }
 0x142   : > { %v1203_v36 = vxor.u32 2147483648, %v1202_v0  ;;  %v1251_v5 = vor.u32 %v1250_v8, %v1249_v2  ;;  %v1252_v21 = vshll.u32 %v2231_v33, %v1237_v20  ;;  %v1253_v22 = vshrl.u32 %v2232_v41, %v1238_v25 }
 0x143   : > { %vm486_vm14 = vcmp.lt.s32.totalorder %v2602_v45, 2  ;;  %v561_v26 = vsub.s32 0, %v2623_v9  ;;  %v1242_v60 = vor.u32 %v1241_v57, %v1240_v52  ;;  %v1245_v1 = vor.u32 %v1244_v59, %v1243_v55 }
 0x144   : > { %v602_v12 = vand.u32 2139095040, %v2591_v6  ;;  %vm483_vm15 = vweird.f32 %v2377_v42  ;;  %v1204_v18 = vsel %vm1121_vm4, %v1203_v36, %v1202_v0  ;;  %v551_v17 = vadd.s32 %v2563_v53, %v2571_v46 }
 0x145   : > { %v1248_v28 = vor.u32 %v1247_v61, %v1246_v58  ;;  %v2638_v30 = vshll.u32 %v1231_v51, 8  ;;  %v1207_v35 = vsel %vm2549_vm6, %v2380_v43, %v1204_v18  ;;  %v1873_v34 = vmin.u32 %v561_v26, %v2623_v9 }
 0x146   : > { %v582_v20 = vsel %vm497_vm10, %v581_v16, %v557_v62  ;;  %vm1258_vm0 = vcmp.lt.s32.totalorder %v2625_v7, 4  ;;  %2151 = vcosq.f32 %v1207_v35  ;;  %v1254_v37 = vor.u32 %v1253_v22, %v1252_v21 }
 0x147   : > { %vm1255_vm1 = vcmp.lt.s32.totalorder %v2625_v7, 1  ;;  %v1264_v53 = vsel %vm1258_vm0, %v1251_v5, 920167782  ;;  %2153 = vsinq.f32 %v1207_v35  ;;  %v563_v38 = vclz %v1873_v34 }
 0x148   : > { %v2148_v46 = vpop.eup %2147  ;;  %vm1257_vm2 = vcmp.lt.s32.totalorder %v2625_v7, 3  ;;  %v1263_v24 = vsel %vm1255_vm1, %v1242_v60, %v1245_v1  ;;  %v584_v32 = vsel %vm2610_vm11, 0, %v582_v20  ;;  %v1239_v47 = vshrl.u32 %v2227_v23, %v1238_v25 }
 0x149   : > { %v2150_v40 = vpop.eup %2149  ;;  %v491_v44 = vxor.u32 2147483648, %v2148_v46  ;;  %v1265_v50 = vsel %vm1257_vm2, %v1248_v28, %v1264_v53  ;;  %v1874_v51 = vadd.s32 4294967294, %v563_v38  ;;  %vm1256_vm3 = vcmp.lt.s32.totalorder %v2625_v7, 2 }
 0x14a   : > { %v488_v62 = vxor.u32 2147483648, %v2150_v40  ;;  %v1260_v52 = vsel %vm1258_vm0, %v1248_v28, 2102212464  ;;  %v1266_v63 = vsel %vm1256_vm3, %v1263_v24, %v1265_v50  ;;  %v1267_v55 = vsel %vm1255_vm1, %v1245_v1, %v1248_v28 }
 0x14b   : > { %v492_v48 = vsel %vm490_vm12, %v491_v44, %v2150_v40  ;;  %v1268_v25 = vsel %vm1258_vm0, %v1254_v37, 1326507024  ;;  %vm1875_vm4 = vcmp.lt.s32.totalorder %v1874_v51, 0  ;;  %v603_v59 = vshrl.u32 %v602_v12, 23 }
 0x14c   : > { %v489_v56 = vsel %vm487_vm13, %v2148_v46, %v488_v62  ;;  %v1269_v57 = vsel %vm1257_vm2, %v1251_v5, %v1268_v25  ;;  %vm1214_vm5 = vcmp.lt.s32.totalorder %v2621_v4, 2  ;;  %v566_v0 = vsel %vm1875_vm4, 0, %v1874_v51 }
 0x14d   : > { %v493_v58 = vsel %vm486_vm14, %v489_v56, %v492_v48  ;;  %v1259_v61 = vsel %vm1255_vm1, %v1239_v47, %v1242_v60  ;;  %v1270_v2 = vsel %vm1256_vm3, %v1267_v55, %v1269_v57  ;;  %vm1211_vm6 = vweird.f32 %v2380_v43  ;;  %v2702_v60 = vpop.f32.mrb[10].mxu0 }
 0x14e   : > { %v494_v8 = vsel %vm483_vm15, nan, %v493_v58  ;;  %v567_v16 = vsub.s32 32, %v566_v0  ;;  %v571_v36 = vsub.s32 4294967266, %v566_v0  ;;  %v1261_v45 = vsel %vm1257_vm2, %v1245_v1, %v1260_v52  ;;  %v2000_v35 = vpop.f32.mrb[11].mxu0 }
 0x14f   : > { %1743 = vst [vmem:[%s2674_s6] sm:$0xff] %v494_v8  ;;  %v2694_v5 = vmul.u32.u64.low %v2638_v30, %v1270_v2  ;;  %v2695_v21 = vmul.u32.u64.high %v2638_v30, %v1270_v2, %v2694_v5  ;;  %v2698_v22 = vmul.u32.u64.low %v2638_v30, %v1266_v63  ;;  %v2699_v26 = vmul.u32.u64.high %v2638_v30, %v1266_v63, %v2698_v22 }
 0x150   : > { %v568_v42 = vshll.u32 %v2623_v9, %v566_v0  ;;  %v569_v12 = vshrl.u32 %v551_v17, %v567_v16  ;;  %v572_v18 = vadd.s32 127, %v571_v36  ;;  %v1876_v28 = vadd.s32 4294967169, %v603_v59  ;;  %v2152_v34 = vpop.eup %2151 }
 0x151   : > { %vm1215_vm7 = vcmp.eq.s32.totalorder %v2621_v4, 0  ;;  %vm1218_vm8 = vcmp.eq.s32.totalorder %v2621_v4, 2  ;;  %v1262_v1 = vsel %vm1256_vm3, %v1259_v61, %v1261_v45  ;;  %v599_v20 = vand.u32 2147483647, %v2591_v6  ;;  %v2154_v37 = vpop.eup %2153 }
 0x152   : > { %v1219_v53 = vxor.u32 2147483648, %v2152_v34  ;;  %v570_v46 = vor.u32 %v569_v12, %v568_v42  ;;  %v573_v38 = vshll.u32 %v572_v18, 23  ;;  %v609_v24 = vadd.s32 1, %v1876_v28 }
 0x153   : > { %v1216_v9 = vxor.u32 2147483648, %v2154_v37  ;;  %v588_v17 = vadd.s32 3, %v584_v32  ;;  %vm1280_vm9 = vc.u32 %v2695_v21, %v2698_v22  ;;  %v1281_v40 = vadd.s32 1, %v2699_v26 }
 0x154   : > { %v1220_v44 = vsel %vm1218_vm8, %v1219_v53, %v2154_v37  ;;  %v574_v47 = vor.u32 4788187, %v573_v38  ;;  %v1278_v7 = vmul.u32 %v2638_v30, %v1262_v1  ;;  %vm610_vm12 = vcmp.gt.s32.totalorder %v609_v24, 0 }
 0x155   : > { %v1217_v50 = vsel %vm1215_vm7, %v2152_v34, %v1216_v9  ;;  %v1282_v62 = vsel %vm1280_vm9, %v1281_v40, %v2699_v26  ;;  %v606_v51 = vand.u32 8388607, %v599_v20  ;;  %v611_v32 = vsel %vm610_vm12, %v609_v24, 0 }
 0x156   : > { %v1221_v52 = vsel %vm1214_vm5, %v1217_v50, %v1220_v44  ;;  %v575_v48 = vand.u32 2147483647, %v574_v47  ;;  %v577_v63 = vcvt.s32.f32 %v570_v46  ;;  %v1283_v55 = vadd.s32 %v1282_v62, %v1278_v7 }
 0x157   : > { %v1222_v25 = vsel %vm1211_vm6, nan, %v1221_v52  ;;  %v613_v30 = vand.u32 31, %v611_v32  ;;  %v2724_v57 = vand.u32 3, %v588_v17  ;;  %v607_v58 = vor.u32 8388608, %v606_v51 }
 0x158   : > { %1750 = vst [vmem:[%s2674_s6 + $0x38] sm:$0xff] %v1222_v25  ;;  %v578_v56 = vmul.f32 %v577_v63, %v575_v48  ;;  %v1284_v59 = vadd.s32 536870912, %v1283_v55  ;;  %v612_v0 = vshrl.u32 %v611_v32, 5  ;;  %v1330_v2 = vand.u32 2139095040, %v2597_v13 }
 0x159   : > { %v614_v61 = vsub.s32 32, %v613_v30  ;;  %v616_v16 = vshll.u32 %v2227_v23, %v613_v30  ;;  %v619_v36 = vshll.u32 %v2228_v27, %v613_v30  ;;  %v622_v5 = vshll.u32 %v2229_v29, %v613_v30 }
 0x15a   : > { %v579_v8 = vxor.u32 2147483648, %v578_v56  ;;  %v1285_v4 = vshrl.u32 %v1284_v59, 30  ;;  %v625_v18 = vshll.u32 %v2230_v31, %v613_v30  ;;  %vm1225_vm13 = vcmp.lt.s32.totalorder %v2402_v14, 0 }
 0x15b   : > { %v617_v43 = vshrl.u32 %v2228_v27, %v614_v61  ;;  %v620_v45 = vshrl.u32 %v2229_v29, %v614_v61  ;;  %v623_v26 = vshrl.u32 %v2230_v31, %v614_v61  ;;  %v626_v28 = vshrl.u32 %v2231_v33, %v614_v61 }
 0x15c   : > { %v580_v42 = vsel %vm497_vm10, %v579_v8, %v578_v56  ;;  %v1286_v12 = vshll.u32 %v1285_v4, 30  ;;  %v1331_v38 = vshrl.u32 %v1330_v2, 23  ;;  %v628_v24 = vshll.u32 %v2231_v33, %v613_v30 }
 0x15d   : > { %v583_v35 = vsel %vm2610_vm11, %v2389_v54, %v580_v42  ;;  %v618_v34 = vor.u32 %v617_v43, %v616_v16  ;;  %v621_v1 = vor.u32 %v620_v45, %v619_v36  ;;  %v624_v37 = vor.u32 %v623_v26, %v622_v5  ;;  %v2776_v5 = vpop.f32.mrb[10].mxu1 }
 0x15e   : > { %2155 = vcosq.f32 %v583_v35  ;;  %v2741_v53 = vsub.s32 %v1283_v55, %v1286_v12  ;;  %v627_v46 = vor.u32 %v626_v28, %v625_v18  ;;  %v629_v9 = vshrl.u32 %v2232_v41, %v614_v61  ;;  %v2021_v18 = vpop.f32.mrb[11].mxu1 }
 0x15f   : > { %2157 = vsinq.f32 %v583_v35  ;;  %vm631_vm10 = vcmp.lt.s32.totalorder %v612_v0, 1  ;;  %vm2747_vm14 = vcmp.le.f32.partialorder %v1223_v19, 0.7853982  ;;  %vm632_vm11 = vcmp.lt.s32.totalorder %v612_v0, 2 }
 0x160   : > { %v1289_v17 = vsub.s32 0, %v2741_v53  ;;  %vm633_vm15 = vcmp.lt.s32.totalorder %v612_v0, 3  ;;  %vm634_vm0 = vcmp.lt.s32.totalorder %v612_v0, 4  ;;  %v630_v40 = vor.u32 %v629_v9, %v628_v24 }
 0x161   : > { %v636_v44 = vsel %vm634_vm0, %v624_v37, 2102212464  ;;  %v639_v47 = vsel %vm631_vm10, %v618_v34, %v621_v1  ;;  %v640_v7 = vsel %vm634_vm0, %v627_v46, 920167782  ;;  %v1309_v62 = vsub.s32 4, %v1285_v4 }
 0x162   : > { %v1901_v50 = vmin.u32 %v1289_v17, %v2741_v53  ;;  %v615_v51 = vshrl.u32 %v2227_v23, %v614_v61  ;;  %v641_v19 = vsel %vm633_vm15, %v624_v37, %v640_v7  ;;  %v643_v52 = vsel %vm631_vm10, %v621_v1, %v624_v37 }
 0x163   : > { %v642_v32 = vsel %vm632_vm11, %v639_v47, %v641_v19  ;;  %v644_v48 = vsel %vm634_vm0, %v630_v40, 1326507024  ;;  %v647_v63 = vshll.u32 %v607_v58, 8  ;;  %vm590_vm1 = vcmp.lt.s32.totalorder %v2724_v57, 2 }
 0x164   : > { %v1291_v55 = vclz %v1901_v50  ;;  %v635_v25 = vsel %vm631_vm10, %v615_v51, %v618_v34  ;;  %v637_v30 = vsel %vm633_vm15, %v621_v1, %v636_v44  ;;  %vm587_vm2 = vweird.f32 %v2389_v54 }
 0x165   : > { %vm591_vm3 = vcmp.eq.s32.totalorder %v2724_v57, 0  ;;  %v645_v56 = vsel %vm633_vm15, %v627_v46, %v644_v48  ;;  %v2764_v59 = vmul.u32.u64.low %v647_v63, %v642_v32  ;;  %v2765_v61 = vmul.u32.u64.high %v647_v63, %v642_v32, %v2764_v59 }
 0x166   : > { %v1902_v2 = vadd.s32 4294967294, %v1291_v55  ;;  %v1310_v58 = vsel %vm1225_vm13, %v1309_v62, %v1285_v4  ;;  %v646_v8 = vsel %vm632_vm11, %v643_v52, %v645_v56  ;;  %v1904_v16 = vadd.s32 4294967169, %v1331_v38 }
 0x167   : > { %vm594_vm4 = vcmp.eq.s32.totalorder %v2724_v57, 2  ;;  %v638_v36 = vsel %vm632_vm11, %v635_v25, %v637_v30  ;;  %v2773_v43 = vmul.u32.u64.low %v647_v63, %v646_v8  ;;  %v2774_v45 = vmul.u32.u64.high %v647_v63, %v646_v8, %v2773_v43 }
 0x168   : > { %v2156_v26 = vpop.eup %2155  ;;  %v1279_v42 = vadd.s32 %v2698_v22, %v2695_v21  ;;  %vm1903_vm5 = vcmp.lt.s32.totalorder %v1902_v2, 0  ;;  %v1327_v12 = vand.u32 2147483647, %v2597_v13  ;;  %v1337_v4 = vadd.s32 1, %v1904_v16 }
 0x169   : > { %v2158_v28 = vpop.eup %2157  ;;  %v595_v35 = vxor.u32 2147483648, %v2156_v26  ;;  %v1294_v34 = vsel %vm1903_vm5, 0, %v1902_v2  ;;  %v1312_v0 = vsel %vm2747_vm14, 0, %v1310_v58  ;;  %v657_v1 = vadd.s32 1, %v2765_v61 }
 0x16a   : > { %v592_v37 = vxor.u32 2147483648, %v2158_v28  ;;  %v1295_v46 = vsub.s32 32, %v1294_v34  ;;  %v1299_v38 = vsub.s32 4294967266, %v1294_v34  ;;  %v654_v24 = vmul.u32 %v647_v63, %v638_v36 }
 0x16b   : > { %v596_v21 = vsel %vm594_vm4, %v595_v35, %v2158_v28  ;;  %v1296_v22 = vshll.u32 %v2741_v53, %v1294_v34  ;;  %vm656_vm6 = vc.u32 %v2774_v45, %v2764_v59  ;;  %vm1338_vm7 = vcmp.gt.s32.totalorder %v1337_v4, 0 }
 0x16c   : > { %v593_v9 = vsel %vm591_vm3, %v2156_v26, %v592_v37  ;;  %v1297_v17 = vshrl.u32 %v1279_v42, %v1295_v46  ;;  %v1300_v40 = vadd.s32 127, %v1299_v38  ;;  %v658_v44 = vsel %vm656_vm6, %v657_v1, %v2765_v61 }
 0x16d   : > { %v597_v47 = vsel %vm590_vm1, %v593_v9, %v596_v21  ;;  %v659_v7 = vadd.s32 %v658_v44, %v654_v24  ;;  %v1334_v50 = vand.u32 8388607, %v1327_v12  ;;  %v1339_v62 = vsel %vm1338_vm7, %v1337_v4, 0 }
 0x16e   : > { %v598_v53 = vsel %vm587_vm2, nan, %v597_v47  ;;  %v1298_v51 = vor.u32 %v1297_v17, %v1296_v22  ;;  %v1301_v19 = vshll.u32 %v1300_v40, 23  ;;  %v1341_v52 = vand.u32 31, %v1339_v62 }
 0x16f   : > { %1744 = vst [vmem:[%s2674_s6 + $0x8] sm:$0xff] %v598_v53  ;;  %v660_v32 = vadd.s32 536870912, %v659_v7  ;;  %v1316_v63 = vadd.s32 3, %v1312_v0  ;;  %v1335_v57 = vor.u32 8388608, %v1334_v50  ;;  %v1340_v8 = vshrl.u32 %v1339_v62, 5 }
 0x170   : > { %v1302_v48 = vor.u32 4788187, %v1301_v19  ;;  %v1305_v55 = vcvt.s32.f32 %v1298_v51  ;;  %v1342_v30 = vsub.s32 32, %v1341_v52  ;;  %v1344_v61 = vshll.u32 %v2227_v23, %v1341_v52 }
 0x171   : > { %v2799_v25 = vshrl.u32 %v660_v32, 30  ;;  %v1347_v2 = vshll.u32 %v2228_v27, %v1341_v52  ;;  %v1350_v54 = vshll.u32 %v2229_v29, %v1341_v52  ;;  %v1353_v36 = vshll.u32 %v2230_v31, %v1341_v52 }
 0x172   : > { %v1303_v56 = vand.u32 2147483647, %v1302_v48  ;;  %v1345_v16 = vshrl.u32 %v2228_v27, %v1342_v30  ;;  %v1348_v26 = vshrl.u32 %v2229_v29, %v1342_v30  ;;  %v1351_v42 = vshrl.u32 %v2230_v31, %v1342_v30 }
 0x173   : > { %v662_v58 = vshll.u32 %v2799_v25, 30  ;;  %v1354_v4 = vshrl.u32 %v2231_v33, %v1342_v30  ;;  %v1356_v28 = vshll.u32 %v2231_v33, %v1341_v52  ;;  %v1357_v35 = vshrl.u32 %v2232_v41, %v1342_v30 }
 0x174   : > { %v1306_v43 = vmul.f32 %v1305_v55, %v1303_v56  ;;  %v1346_v0 = vor.u32 %v1345_v16, %v1344_v61  ;;  %v1349_v1 = vor.u32 %v1348_v26, %v1347_v2  ;;  %v1352_v37 = vor.u32 %v1351_v42, %v1350_v54 }
 0x175   : > { %v2810_v18 = vsub.s32 %v659_v7, %v662_v58  ;;  %v2814_v46 = vand.u32 3, %v1316_v63  ;;  %v1355_v24 = vor.u32 %v1354_v4, %v1353_v36  ;;  %v2819_v21 = vadd.f32 %v2374_v39, %v2399_v10  ;;  %v2859_v4 = vpop.f32.mrb[12].mxu0 }
 0x176   : > { %v1307_v34 = vxor.u32 2147483648, %v1306_v43  ;;  %vm601_vm8 = vcmp.lt.s32.totalorder %v2591_v6, 0  ;;  %v1343_v9 = vshrl.u32 %v2227_v23, %v1342_v30  ;;  %vm1359_vm9 = vcmp.lt.s32.totalorder %v1340_v8, 1 }
 0x177   : > { %v665_v38 = vsub.s32 0, %v2810_v18  ;;  %v1375_v17 = vshll.u32 %v1335_v57, 8  ;;  %v1358_v47 = vor.u32 %v1357_v35, %v1356_v28  ;;  %vm1362_vm12 = vcmp.lt.s32.totalorder %v1340_v8, 4  ;;  %v2003_v28 = vpop.f32.mrb[13].mxu0 }
 0x178   : > { %v1308_v22 = vsel %vm1225_vm13, %v1307_v34, %v1306_v43  ;;  %v1364_v39 = vsel %vm1362_vm12, %v1352_v37, 2102212464  ;;  %v1367_v10 = vsel %vm1359_vm9, %v1346_v0, %v1349_v1  ;;  %v1368_v7 = vsel %vm1362_vm12, %v1355_v24, 920167782 }
 0x179   : > { %v1311_v40 = vsel %vm2747_vm14, %v2402_v14, %v1308_v22  ;;  %v1877_v44 = vmin.u32 %v665_v38, %v2810_v18  ;;  %vm1360_vm13 = vcmp.lt.s32.totalorder %v1340_v8, 2  ;;  %vm1361_vm10 = vcmp.lt.s32.totalorder %v1340_v8, 3 }
 0x17a   : > { %2159 = vcosq.f32 %v1311_v40  ;;  %v685_v62 = vsub.s32 4, %v2799_v25  ;;  %v1363_v49 = vsel %vm1359_vm9, %v1343_v9, %v1346_v0  ;;  %v1369_v53 = vsel %vm1361_vm10, %v1352_v37, %v1368_v7 }
 0x17b   : > { %2161 = vsinq.f32 %v1311_v40  ;;  %v667_v50 = vclz %v1877_v44  ;;  %v1371_v51 = vsel %vm1359_vm9, %v1349_v1, %v1352_v37  ;;  %v1365_v32 = vsel %vm1361_vm10, %v1349_v1, %v1364_v39  ;;  %v2874_v39 = vld [vmem:[%s3423_s2] ss:$0 sm:$0xff] }
 0x17c   : > { %v1370_v52 = vsel %vm1360_vm13, %v1367_v10, %v1369_v53  ;;  %v1372_v48 = vsel %vm1362_vm12, %v1358_v47, 1326507024  ;;  %v706_v30 = vand.u32 2139095040, %v2819_v21  ;;  %vm2844_vm14 = vcmp.le.f32.partialorder %v599_v20, 0.7853982 }
 0x17d   : > { %v1878_v19 = vadd.s32 4294967294, %v667_v50  ;;  %v1373_v63 = vsel %vm1361_vm10, %v1355_v24, %v1372_v48  ;;  %v2837_v55 = vmul.u32.u64.low %v1375_v17, %v1370_v52  ;;  %v2838_v57 = vmul.u32.u64.high %v1375_v17, %v1370_v52, %v2837_v55 }
 0x17e   : > { %v655_v61 = vadd.s32 %v2764_v59, %v2774_v45  ;;  %v1374_v2 = vsel %vm1360_vm13, %v1371_v51, %v1373_v63  ;;  %vm1318_vm15 = vcmp.lt.s32.totalorder %v2814_v46, 2  ;;  %v707_v36 = vshrl.u32 %v706_v30, 23 }
 0x17f   : > { %vm1879_vm11 = vcmp.lt.s32.totalorder %v1878_v19, 0  ;;  %v2852_v58 = vmul.u32.u64.low %v1375_v17, %v1374_v2  ;;  %v2853_v16 = vmul.u32.u64.high %v1375_v17, %v1374_v2, %v2852_v58  ;;  %v686_v20 = vsel %vm601_vm8, %v685_v62, %v2799_v25 }
 0x180   : > { %v670_v54 = vsel %vm1879_vm11, 0, %v1878_v19  ;;  %v1366_v42 = vsel %vm1360_vm13, %v1363_v49, %v1365_v32  ;;  %vm1319_vm0 = vcmp.eq.s32.totalorder %v2814_v46, 0  ;;  %vm1322_vm1 = vcmp.eq.s32.totalorder %v2814_v46, 2 }
 0x181   : > { %v671_v43 = vsub.s32 32, %v670_v54  ;;  %v675_v26 = vsub.s32 4294967266, %v670_v54  ;;  %v1385_v59 = vadd.s32 1, %v2838_v57  ;;  %v1880_v45 = vadd.s32 4294967169, %v707_v36 }
 0x182   : > { %v672_v35 = vshll.u32 %v2810_v18, %v670_v54  ;;  %v703_v1 = vand.u32 2147483647, %v2819_v21  ;;  %v688_v25 = vsel %vm2844_vm14, 0, %v686_v20  ;;  %v1382_v8 = vmul.u32 %v1375_v17, %v1366_v42 }
 0x183   : > { %v673_v34 = vshrl.u32 %v655_v61, %v671_v43  ;;  %v676_v0 = vadd.s32 127, %v675_v26  ;;  %vm1384_vm2 = vc.u32 %v2853_v16, %v2837_v55  ;;  %v713_v38 = vadd.s32 1, %v1880_v45 }
 0x184   : > { %v2160_v37 = vpop.eup %2159  ;;  %v1386_v44 = vsel %vm1384_vm2, %v1385_v59, %v2838_v57  ;;  %v2878_v17 = vadd.f32 %v2874_v39, %v2404_v15  ;;  %v692_v50 = vadd.s32 3, %v688_v25  ;;  %v710_v51 = vand.u32 8388607, %v703_v1 }
 0x185   : > { %v2162_v24 = vpop.eup %2161  ;;  %v1323_v22 = vxor.u32 2147483648, %v2160_v37  ;;  %v674_v9 = vor.u32 %v673_v34, %v672_v35  ;;  %v677_v40 = vshll.u32 %v676_v0, 23  ;;  %v1387_v47 = vadd.s32 %v1386_v44, %v1382_v8 }
 0x186   : > { %v1320_v18 = vxor.u32 2147483648, %v2162_v24  ;;  %vm714_vm3 = vcmp.gt.s32.totalorder %v713_v38, 0  ;;  %vm1315_vm4 = vweird.f32 %v2402_v14  ;;  %v1434_v30 = vand.u32 2139095040, %v2878_v17 }
 0x187   : > { %v1324_v10 = vsel %vm1322_vm1, %v1323_v22, %v2162_v24  ;;  %v678_v7 = vor.u32 4788187, %v677_v40  ;;  %v715_v62 = vsel %vm714_vm3, %v713_v38, 0  ;;  %v1388_v53 = vadd.s32 536870912, %v1387_v47 }
 0x188   : > { %v1321_v49 = vsel %vm1319_vm0, %v2160_v37, %v1320_v18  ;;  %v717_v19 = vand.u32 31, %v715_v62  ;;  %v681_v52 = vcvt.s32.f32 %v674_v9  ;;  %v2891_v2 = vand.u32 3, %v692_v50 }
 0x189   : > { %v1325_v15 = vsel %vm1318_vm15, %v1321_v49, %v1324_v10  ;;  %v679_v32 = vand.u32 2147483647, %v678_v7  ;;  %v1389_v63 = vshrl.u32 %v1388_v53, 30  ;;  %v711_v58 = vor.u32 8388608, %v710_v51 }
 0x18a   : > { %v1326_v48 = vsel %vm1315_vm4, nan, %v1325_v15  ;;  %v718_v57 = vsub.s32 32, %v717_v19  ;;  %v720_v36 = vshll.u32 %v2227_v23, %v717_v19  ;;  %vm1329_vm5 = vcmp.lt.s32.totalorder %v2597_v13, 0 }
 0x18b   : > { %1751 = vst [vmem:[%s2674_s6 + $0x40] sm:$0xff] %v1326_v48  ;;  %v682_v61 = vmul.f32 %v681_v52, %v679_v32  ;;  %v1390_v54 = vshll.u32 %v1389_v63, 30  ;;  %v716_v59 = vshrl.u32 %v715_v62, 5  ;;  %v723_v45 = vshll.u32 %v2228_v27, %v717_v19 }
 0x18c   : > { %v721_v14 = vshrl.u32 %v2228_v27, %v718_v57  ;;  %v724_v46 = vshrl.u32 %v2229_v29, %v718_v57  ;;  %v727_v26 = vshrl.u32 %v2230_v31, %v718_v57  ;;  %v730_v20 = vshrl.u32 %v2231_v33, %v718_v57 }
 0x18d   : > { %v683_v43 = vxor.u32 2147483648, %v682_v61  ;;  %v2899_v42 = vsub.s32 %v1387_v47, %v1390_v54  ;;  %v1435_v28 = vshrl.u32 %v1434_v30, 23  ;;  %v726_v0 = vshll.u32 %v2229_v29, %v717_v19 }
 0x18e   : > { %v722_v34 = vor.u32 %v721_v14, %v720_v36  ;;  %v729_v37 = vshll.u32 %v2230_v31, %v717_v19  ;;  %v725_v38 = vor.u32 %v724_v46, %v723_v45  ;;  %v732_v24 = vshll.u32 %v2231_v33, %v717_v19 }
 0x18f   : > { %v684_v35 = vsel %vm601_vm8, %v683_v43, %v682_v61  ;;  %v1393_v8 = vsub.s32 0, %v2899_v42  ;;  %v728_v22 = vor.u32 %v727_v26, %v726_v0  ;;  %v733_v40 = vshrl.u32 %v2232_v41, %v718_v57 }
 0x190   : > { %v687_v25 = vsel %vm2844_vm14, %v2591_v6, %v684_v35  ;;  %v731_v9 = vor.u32 %v730_v20, %v729_v37  ;;  %vm2914_vm6 = vcmp.le.f32.partialorder %v1327_v12, 0.7853982  ;;  %v751_v18 = vshll.u32 %v711_v58, 8 }
 0x191   : > { %2163 = vcosq.f32 %v687_v25  ;;  %v1905_v56 = vmin.u32 %v1393_v8, %v2899_v42  ;;  %v1908_v47 = vadd.s32 4294967169, %v1435_v28  ;;  %v1413_v10 = vsub.s32 4, %v1389_v63 }
 0x192   : > { %2165 = vsinq.f32 %v687_v25  ;;  %v719_v7 = vshrl.u32 %v2227_v23, %v718_v57  ;;  %v734_v50 = vor.u32 %v733_v40, %v732_v24  ;;  %vm735_vm7 = vcmp.lt.s32.totalorder %v716_v59, 1 }
 0x193   : > { %v1395_v62 = vclz %v1905_v56  ;;  %vm737_vm8 = vcmp.lt.s32.totalorder %v716_v59, 3  ;;  %vm738_vm9 = vcmp.lt.s32.totalorder %v716_v59, 4  ;;  %v743_v49 = vsel %vm735_vm7, %v722_v34, %v725_v38 }
 0x194   : > { %v740_v53 = vsel %vm738_vm9, %v728_v22, 2102212464  ;;  %v744_v51 = vsel %vm738_vm9, %v731_v9, 920167782  ;;  %v747_v19 = vsel %vm735_vm7, %v725_v38, %v728_v22  ;;  %v748_v12 = vsel %vm738_vm9, %v734_v50, 1326507024 }
 0x195   : > { %v1906_v15 = vadd.s32 4294967294, %v1395_v62  ;;  %vm736_vm12 = vcmp.lt.s32.totalorder %v716_v59, 2  ;;  %v745_v32 = vsel %vm737_vm8, %v728_v22, %v744_v51  ;;  %v749_v52 = vsel %vm737_vm8, %v731_v9, %v748_v12 }
 0x196   : > { %vm694_vm13 = vcmp.lt.s32.totalorder %v2891_v2, 2  ;;  %v1414_v48 = vsel %vm1329_vm5, %v1413_v10, %v1389_v63  ;;  %v739_v57 = vsel %vm735_vm7, %v719_v7, %v722_v34  ;;  %v746_v30 = vsel %vm736_vm12, %v743_v49, %v745_v32 }
 0x197   : > { %v750_v61 = vsel %vm736_vm12, %v747_v19, %v749_v52  ;;  %vm691_vm10 = vweird.f32 %v2591_v6  ;;  %vm1907_vm14 = vcmp.lt.s32.totalorder %v1906_v15, 0  ;;  %v741_v54 = vsel %vm737_vm8, %v725_v38, %v740_v53 }
 0x198   : > { %v2929_v58 = vmul.u32.u64.low %v751_v18, %v750_v61  ;;  %v2930_v36 = vmul.u32.u64.high %v751_v18, %v750_v61, %v2929_v58  ;;  %v1398_v14 = vsel %vm1907_vm14, 0, %v1906_v15  ;;  %v1441_v26 = vadd.s32 1, %v1908_v47 }
 0x199   : > { %v2932_v43 = vmul.u32.u64.low %v751_v18, %v746_v30  ;;  %v2933_v46 = vmul.u32.u64.high %v751_v18, %v746_v30, %v2932_v43  ;;  %vm695_vm11 = vcmp.eq.s32.totalorder %v2891_v2, 0  ;;  %v1383_v63 = vadd.s32 %v2837_v55, %v2853_v16 }
 0x19a   : > { %v1399_v20 = vsub.s32 32, %v1398_v14  ;;  %v1403_v45 = vsub.s32 4294967266, %v1398_v14  ;;  %vm698_vm15 = vcmp.eq.s32.totalorder %v2891_v2, 2  ;;  %v1416_v35 = vsel %vm2914_vm6, 0, %v1414_v48 }
 0x19b   : > { %v2164_v28 = vpop.eup %2163  ;;  %v742_v34 = vsel %vm736_vm12, %v739_v57, %v741_v54  ;;  %vm1442_vm0 = vcmp.gt.s32.totalorder %v1441_v26, 0  ;;  %v1400_v25 = vshll.u32 %v2899_v42, %v1398_v14  ;;  %vm760_vm1 = vc.u32 %v2930_v36, %v2932_v43 }
 0x19c   : > { %v2166_v0 = vpop.eup %2165  ;;  %v699_v37 = vxor.u32 2147483648, %v2164_v28  ;;  %v1401_v8 = vshrl.u32 %v1383_v63, %v1399_v20  ;;  %v1404_v38 = vadd.s32 127, %v1403_v45  ;;  %v761_v55 = vadd.s32 1, %v2933_v46 }
 0x19d   : > { %v696_v24 = vxor.u32 2147483648, %v2166_v0  ;;  %v1443_v16 = vsel %vm1442_vm0, %v1441_v26, 0  ;;  %v758_v59 = vmul.u32 %v751_v18, %v742_v34  ;;  %v1431_v42 = vand.u32 2147483647, %v2878_v17 }
 0x19e   : > { %v700_v22 = vsel %vm698_vm15, %v699_v37, %v2166_v0  ;;  %v1402_v9 = vor.u32 %v1401_v8, %v1400_v25  ;;  %v1405_v40 = vshll.u32 %v1404_v38, 23  ;;  %v762_v47 = vsel %vm760_vm1, %v761_v55, %v2933_v46 }
 0x19f   : > { %v697_v56 = vsel %vm695_vm11, %v2164_v28, %v696_v24  ;;  %v1445_v10 = vand.u32 31, %v1443_v16  ;;  %v1420_v62 = vadd.s32 3, %v1416_v35  ;;  %v763_v49 = vadd.s32 %v762_v47, %v758_v59 }
 0x1a0   : > { %v701_v7 = vsel %vm694_vm13, %v697_v56, %v700_v22  ;;  %v1406_v50 = vor.u32 4788187, %v1405_v40  ;;  %v1409_v51 = vcvt.s32.f32 %v1402_v9  ;;  %v1438_v54 = vand.u32 8388607, %v1431_v42 }
 0x1a1   : > { %v702_v53 = vsel %vm691_vm10, nan, %v701_v7  ;;  %v1446_v19 = vsub.s32 32, %v1445_v10  ;;  %v1448_v18 = vshll.u32 %v2227_v23, %v1445_v10  ;;  %v764_v15 = vadd.s32 536870912, %v763_v49 }
 0x1a2   : > { %1745 = vst [vmem:[%s2674_s6 + $0x10] sm:$0xff] %v702_v53  ;;  %v1407_v12 = vand.u32 2147483647, %v1406_v50  ;;  %v1451_v32 = vshll.u32 %v2228_v27, %v1445_v10  ;;  %v1454_v52 = vshll.u32 %v2229_v29, %v1445_v10  ;;  %v1457_v6 = vshll.u32 %v2230_v31, %v1445_v10 }
 0x1a3   : > { %v1449_v2 = vshrl.u32 %v2228_v27, %v1446_v19  ;;  %v1452_v48 = vshrl.u32 %v2229_v29, %v1446_v19  ;;  %v1455_v57 = vshrl.u32 %v2230_v31, %v1446_v19  ;;  %v765_v61 = vshrl.u32 %v764_v15, 30 }
 0x1a4   : > { %v1410_v30 = vmul.f32 %v1409_v51, %v1407_v12  ;;  %v1458_v58 = vshrl.u32 %v2231_v33, %v1446_v19  ;;  %v1444_v14 = vshrl.u32 %v1443_v16, 5  ;;  %v1460_v46 = vshll.u32 %v2231_v33, %v1445_v10 }
 0x1a5   : > { %v1461_v26 = vshrl.u32 %v2232_v41, %v1446_v19  ;;  %v2968_v20 = vand.u32 3, %v1420_v62  ;;  %v766_v45 = vshll.u32 %v765_v61, 30  ;;  %v1450_v28 = vor.u32 %v1449_v2, %v1448_v18 }
 0x1a6   : > { %v1411_v63 = vxor.u32 2147483648, %v1410_v30  ;;  %v1453_v35 = vor.u32 %v1452_v48, %v1451_v32  ;;  %v1456_v34 = vor.u32 %v1455_v57, %v1454_v52  ;;  %v1459_v0 = vor.u32 %v1458_v58, %v1457_v6 }
 0x1a7   : > { %v2972_v25 = vsub.s32 %v763_v49, %v766_v45  ;;  %v1439_v8 = vor.u32 8388608, %v1438_v54  ;;  %v2976_v38 = vadd.f32 %v2874_v39, %v2477_v3  ;;  %v1447_v55 = vshrl.u32 %v2227_v23, %v1446_v19 }
 0x1a8   : > { %v1412_v37 = vsel %vm1329_vm5, %v1411_v63, %v1410_v30  ;;  %v1462_v16 = vor.u32 %v1461_v26, %v1460_v46  ;;  %vm1463_vm2 = vcmp.lt.s32.totalorder %v1444_v14, 1  ;;  %vm2984_vm3 = vcmp.le.f32.partialorder %v703_v1, 0.7853982 }
 0x1a9   : > { %v1415_v24 = vsel %vm2914_vm6, %v2597_v13, %v1412_v37  ;;  %v769_v9 = vsub.s32 0, %v2972_v25  ;;  %vm1465_vm4 = vcmp.lt.s32.totalorder %v1444_v14, 3  ;;  %vm1466_vm5 = vcmp.lt.s32.totalorder %v1444_v14, 4 }
 0x1aa   : > { %2167 = vcosq.f32 %v1415_v24  ;;  %v1468_v3 = vsel %vm1466_vm5, %v1456_v34, 2102212464  ;;  %v1471_v44 = vsel %vm1463_vm2, %v1450_v28, %v1453_v35  ;;  %v1472_v40 = vsel %vm1466_vm5, %v1459_v0, 920167782 }
 0x1ab   : > { %2169 = vsinq.f32 %v1415_v24  ;;  %v1881_v59 = vmin.u32 %v769_v9, %v2972_v25  ;;  %v789_v56 = vsub.s32 4, %v765_v61  ;;  %vm1464_vm6 = vcmp.lt.s32.totalorder %v1444_v14, 2 }
 0x1ac   : > { %v1473_v47 = vsel %vm1465_vm4, %v1456_v34, %v1472_v40  ;;  %v1475_v10 = vsel %vm1463_vm2, %v1453_v35, %v1456_v34  ;;  %v1476_v7 = vsel %vm1466_vm5, %v1462_v16, 1326507024  ;;  %v1479_v50 = vshll.u32 %v1439_v8, 8 }
 0x1ad   : > { %v1474_v1 = vsel %vm1464_vm6, %v1471_v44, %v1473_v47  ;;  %vm705_vm7 = vcmp.lt.s32.totalorder %v2819_v21, 0  ;;  %v771_v62 = vclz %v1881_v59  ;;  %v1467_v49 = vsel %vm1463_vm2, %v1447_v55, %v1450_v28 }
 0x1ae   : > { %v1469_v53 = vsel %vm1465_vm4, %v1453_v35, %v1468_v3  ;;  %vm1423_vm8 = vcmp.eq.s32.totalorder %v2968_v20, 0  ;;  %v1477_v51 = vsel %vm1465_vm4, %v1459_v0, %v1476_v7  ;;  %v790_v15 = vsel %vm705_vm7, %v789_v56, %v765_v61 }
 0x1af   : > { %v2999_v19 = vmul.u32.u64.low %v1479_v50, %v1474_v1  ;;  %v3000_v18 = vmul.u32.u64.high %v1479_v50, %v1474_v1, %v2999_v19  ;;  %v1882_v12 = vadd.s32 4294967294, %v771_v62  ;;  %v1478_v32 = vsel %vm1464_vm6, %v1475_v10, %v1477_v51 }
 0x1b0   : > { %v810_v52 = vand.u32 2139095040, %v2976_v38  ;;  %vm1419_vm9 = vweird.f32 %v2597_v13  ;;  %v1470_v2 = vsel %vm1464_vm6, %v1467_v49, %v1469_v53  ;;  %v807_v6 = vand.u32 2147483647, %v2976_v38 }
 0x1b1   : > { %v3008_v48 = vmul.u32.u64.low %v1479_v50, %v1478_v32  ;;  %v3009_v57 = vmul.u32.u64.high %v1479_v50, %v1478_v32, %v3008_v48  ;;  %vm1426_vm12 = vcmp.eq.s32.totalorder %v2968_v20, 2  ;;  %vm1883_vm13 = vcmp.lt.s32.totalorder %v1882_v12, 0 }
 0x1b2   : > { %v811_v30 = vshrl.u32 %v810_v52, 23  ;;  %v3015_v61 = vadd.f32 %v2874_v39, %v2581_v11  ;;  %v759_v54 = vadd.s32 %v2932_v43, %v2930_v36  ;;  %v774_v58 = vsel %vm1883_vm13, 0, %v1882_v12 }
 0x1b3   : > { %v792_v14 = vsel %vm2984_vm3, 0, %v790_v15  ;;  %v1489_v46 = vadd.s32 1, %v3000_v18  ;;  %v775_v63 = vsub.s32 32, %v774_v58  ;;  %v779_v45 = vsub.s32 4294967266, %v774_v58 }
 0x1b4   : > { %v2168_v26 = vpop.eup %2167  ;;  %v1486_v28 = vmul.u32 %v1479_v50, %v1470_v2  ;;  %v1884_v35 = vadd.s32 4294967169, %v811_v30  ;;  %v776_v37 = vshll.u32 %v2972_v25, %v774_v58  ;;  %vm1488_vm10 = vc.u32 %v3009_v57, %v2999_v19 }
 0x1b5   : > { %v2170_v34 = vpop.eup %2169  ;;  %v1427_v0 = vxor.u32 2147483648, %v2168_v26  ;;  %v814_v11 = vand.u32 8388607, %v807_v6  ;;  %v777_v43 = vshrl.u32 %v759_v54, %v775_v63  ;;  %v780_v8 = vadd.s32 127, %v779_v45 }
 0x1b6   : > { %v1424_v36 = vxor.u32 2147483648, %v2170_v34  ;;  %v1490_v24 = vsel %vm1488_vm10, %v1489_v46, %v3000_v18  ;;  %v817_v9 = vadd.s32 1, %v1884_v35  ;;  %v1538_v3 = vand.u32 2139095040, %v3015_v61 }
 0x1b7   : > { %v1428_v55 = vsel %vm1426_vm12, %v1427_v0, %v2170_v34  ;;  %v1491_v16 = vadd.s32 %v1490_v24, %v1486_v28  ;;  %vm1422_vm14 = vcmp.lt.s32.totalorder %v2968_v20, 2  ;;  %v778_v44 = vor.u32 %v777_v43, %v776_v37 }
 0x1b8   : > { %v1425_v25 = vsel %vm1423_vm8, %v2168_v26, %v1424_v36  ;;  %v781_v40 = vshll.u32 %v780_v8, 23  ;;  %v796_v56 = vadd.s32 3, %v792_v14  ;;  %vm818_vm11 = vcmp.gt.s32.totalorder %v817_v9, 0 }
 0x1b9   : > { %v1429_v59 = vsel %vm1422_vm14, %v1425_v25, %v1428_v55  ;;  %v1492_v47 = vadd.s32 536870912, %v1491_v16  ;;  %v815_v7 = vor.u32 8388608, %v814_v11  ;;  %v819_v50 = vsel %vm818_vm11, %v817_v9, 0 }
 0x1ba   : > { %v1430_v1 = vsel %vm1419_vm9, nan, %v1429_v59  ;;  %v782_v10 = vor.u32 4788187, %v781_v40  ;;  %v821_v49 = vand.u32 31, %v819_v50  ;;  %v1539_v53 = vshrl.u32 %v1538_v3, 23 }
 0x1bb   : > { %1752 = vst [vmem:[%s2674_s6 + $0x48] sm:$0xff] %v1430_v1  ;;  %v1493_v62 = vshrl.u32 %v1492_v47, 30  ;;  %v785_v18 = vcvt.s32.f32 %v778_v44  ;;  %v3036_v20 = vand.u32 3, %v796_v56  ;;  %vm1433_vm15 = vcmp.lt.s32.totalorder %v2878_v17, 0 }
 0x1bc   : > { %v783_v51 = vand.u32 2147483647, %v782_v10  ;;  %v822_v15 = vsub.s32 32, %v821_v49  ;;  %v1487_v52 = vadd.s32 %v2999_v19, %v3009_v57  ;;  %v3040_v13 = vshll.u32 %v815_v7, 8 }
 0x1bd   : > { %v1494_v12 = vshll.u32 %v1493_v62, 30  ;;  %v1535_v2 = vand.u32 2147483647, %v3015_v61  ;;  %v3045_v30 = vshrl.u32 %v819_v50, 5  ;;  %v1912_v58 = vadd.s32 4294967169, %v1539_v53 }
 0x1be   : > { %v786_v32 = vmul.f32 %v785_v18, %v783_v51  ;;  %v825_v54 = vshrl.u32 %v2228_v27, %v822_v15  ;;  %v824_v46 = vshll.u32 %v2227_v23, %v821_v49  ;;  %v828_v26 = vshrl.u32 %v2229_v29, %v822_v15 }
 0x1bf   : > { %v3043_v48 = vsub.s32 %v1491_v16, %v1494_v12  ;;  %v831_v63 = vshrl.u32 %v2230_v31, %v822_v15  ;;  %v827_v57 = vshll.u32 %v2228_v27, %v821_v49  ;;  %v830_v45 = vshll.u32 %v2229_v29, %v821_v49 }
 0x1c0   : > { %v787_v14 = vxor.u32 2147483648, %v786_v32  ;;  %v834_v28 = vshrl.u32 %v2231_v33, %v822_v15  ;;  %v1517_v34 = vsub.s32 4, %v1493_v62  ;;  %v826_v0 = vor.u32 %v825_v54, %v824_v46 }
 0x1c1   : > { %v1497_v19 = vsub.s32 0, %v3043_v48  ;;  %v833_v37 = vshll.u32 %v2230_v31, %v821_v49  ;;  %v829_v43 = vor.u32 %v828_v26, %v827_v57  ;;  %v832_v8 = vor.u32 %v831_v63, %v830_v45 }
 0x1c2   : > { %v788_v35 = vsel %vm705_vm7, %v787_v14, %v786_v32  ;;  %v836_v55 = vshll.u32 %v2231_v33, %v821_v49  ;;  %v837_v16 = vshrl.u32 %v2232_v41, %v822_v15  ;;  %v3066_v3 = vand.u32 8388607, %v1535_v2 }
 0x1c3   : > { %v791_v11 = vsel %vm2984_vm3, %v2819_v21, %v788_v35  ;;  %v1909_v36 = vmin.u32 %v1497_v19, %v3043_v48  ;;  %v835_v24 = vor.u32 %v834_v28, %v833_v37  ;;  %v1545_v25 = vadd.s32 1, %v1912_v58 }
 0x1c4   : > { %2171 = vcosq.f32 %v791_v11  ;;  %v3070_v22 = vsel %vm1433_vm15, %v1517_v34, %v1493_v62  ;;  %v823_v44 = vshrl.u32 %v2227_v23, %v822_v15  ;;  %v838_v40 = vor.u32 %v837_v16, %v836_v55 }
 0x1c5   : > { %2173 = vsinq.f32 %v791_v11  ;;  %v1499_v9 = vclz %v1909_v36  ;;  %vm839_vm0 = vcmp.lt.s32.totalorder %v3045_v30, 1  ;;  %vm3076_vm1 = vcmp.le.f32.partialorder %v1431_v42, 0.7853982 }
 0x1c6   : > { %vm841_vm2 = vcmp.lt.s32.totalorder %v3045_v30, 3  ;;  %vm842_vm3 = vcmp.lt.s32.totalorder %v3045_v30, 4  ;;  %v847_v47 = vsel %vm839_vm0, %v826_v0, %v829_v43  ;;  %v851_v7 = vsel %vm839_vm0, %v829_v43, %v832_v8 }
 0x1c7   : > { %v1910_v56 = vadd.s32 4294967294, %v1499_v9  ;;  %v844_v1 = vsel %vm842_vm3, %v832_v8, 2102212464  ;;  %v848_v10 = vsel %vm842_vm3, %v835_v24, 920167782  ;;  %vm840_vm5 = vcmp.lt.s32.totalorder %v3045_v30, 2 }
 0x1c8   : > { %v852_v50 = vsel %vm842_vm3, %v838_v40, 1326507024  ;;  %v849_v42 = vsel %vm841_vm2, %v832_v8, %v848_v10  ;;  %vm798_vm6 = vcmp.lt.s32.totalorder %v3036_v20, 2  ;;  %v843_v53 = vsel %vm839_vm0, %v823_v44, %v826_v0 }
 0x1c9   : > { %vm1911_vm4 = vcmp.lt.s32.totalorder %v1910_v56, 0  ;;  %v853_v62 = vsel %vm841_vm2, %v835_v24, %v852_v50  ;;  %v850_v51 = vsel %vm840_vm5, %v847_v47, %v849_v42  ;;  %vm795_vm7 = vweird.f32 %v2819_v21 }
 0x1ca   : > { %v1502_v49 = vsel %vm1911_vm4, 0, %v1910_v56  ;;  %v854_v18 = vsel %vm840_vm5, %v851_v7, %v853_v62  ;;  %v845_v32 = vsel %vm841_vm2, %v829_v43, %v844_v1  ;;  %vm1546_vm8 = vcmp.gt.s32.totalorder %v1545_v25, 0 }
 0x1cb   : > { %v1503_v12 = vsub.s32 32, %v1502_v49  ;;  %v1507_v15 = vsub.s32 4294967266, %v1502_v49  ;;  %v3102_v54 = vmul.u32.u64.low %v3040_v13, %v854_v18  ;;  %v3103_v58 = vmul.u32.u64.high %v3040_v13, %v854_v18, %v3102_v54 }
 0x1cc   : > { %v3106_v14 = vmul.u32.u64.low %v3040_v13, %v850_v51  ;;  %v3107_v46 = vmul.u32.u64.high %v3040_v13, %v850_v51, %v3106_v14  ;;  %v1504_v26 = vshll.u32 %v3043_v48, %v1502_v49  ;;  %v1547_v57 = vsel %vm1546_vm8, %v1545_v25, 0 }
 0x1cd   : > { %v1505_v63 = vshrl.u32 %v1487_v52, %v1503_v12  ;;  %v1508_v19 = vadd.s32 127, %v1507_v15  ;;  %vm799_vm9 = vcmp.eq.s32.totalorder %v3036_v20, 0  ;;  %vm802_vm12 = vcmp.eq.s32.totalorder %v3036_v20, 2 }
 0x1ce   : > { %v2172_v45 = vpop.eup %2171  ;;  %v846_v28 = vsel %vm840_vm5, %v843_v53, %v845_v32  ;;  %v1549_v35 = vand.u32 31, %v1547_v57  ;;  %v1543_v36 = vor.u32 8388608, %v3066_v3  ;;  %v1520_v52 = vsel %vm3076_vm1, 0, %v3070_v22 }
 0x1cf   : > { %v2174_v34 = vpop.eup %2173  ;;  %v803_v0 = vxor.u32 2147483648, %v2172_v45  ;;  %v1506_v37 = vor.u32 %v1505_v63, %v1504_v26  ;;  %v1509_v11 = vshll.u32 %v1508_v19, 23  ;;  %vm864_vm13 = vc.u32 %v3103_v58, %v3106_v14 }
 0x1d0   : > { %v800_v43 = vxor.u32 2147483648, %v2174_v34  ;;  %v865_v48 = vadd.s32 1, %v3107_v46  ;;  %v862_v24 = vmul.u32 %v3040_v13, %v846_v28  ;;  %v1550_v55 = vsub.s32 32, %v1549_v35 }
 0x1d1   : > { %v804_v8 = vsel %vm802_vm12, %v803_v0, %v2174_v34  ;;  %v1510_v30 = vor.u32 4788187, %v1509_v11  ;;  %v1513_v9 = vcvt.s32.f32 %v1506_v37  ;;  %v1552_v25 = vshll.u32 %v2227_v23, %v1549_v35 }
 0x1d2   : > { %v801_v16 = vsel %vm799_vm9, %v2172_v45, %v800_v43  ;;  %v866_v3 = vsel %vm864_vm13, %v865_v48, %v3107_v46  ;;  %v1555_v56 = vshll.u32 %v2228_v27, %v1549_v35  ;;  %v1553_v13 = vshrl.u32 %v2228_v27, %v1550_v55 }
 0x1d3   : > { %v805_v22 = vsel %vm798_vm6, %v801_v16, %v804_v8  ;;  %v1511_v44 = vand.u32 2147483647, %v1510_v30  ;;  %v867_v40 = vadd.s32 %v866_v3, %v862_v24  ;;  %v1556_v1 = vshrl.u32 %v2229_v29, %v1550_v55 }
 0x1d4   : > { %v806_v47 = vsel %vm795_vm7, nan, %v805_v22  ;;  %v1558_v10 = vshll.u32 %v2229_v29, %v1549_v35  ;;  %v1559_v42 = vshrl.u32 %v2230_v31, %v1550_v55  ;;  %v1561_v20 = vshll.u32 %v2230_v31, %v1549_v35 }
 0x1d5   : > { %1746 = vst [vmem:[%s2674_s6 + $0x18] sm:$0xff] %v806_v47  ;;  %v1514_v7 = vmul.f32 %v1513_v9, %v1511_v44  ;;  %v868_v50 = vadd.s32 536870912, %v867_v40  ;;  %v1548_v62 = vshrl.u32 %v1547_v57, 5  ;;  %v1554_v49 = vor.u32 %v1553_v13, %v1552_v25 }
 0x1d6   : > { %v1562_v53 = vshrl.u32 %v2231_v33, %v1550_v55  ;;  %v1564_v21 = vshll.u32 %v2231_v33, %v1549_v35  ;;  %v1557_v12 = vor.u32 %v1556_v1, %v1555_v56  ;;  %v1565_v15 = vshrl.u32 %v2232_v41, %v1550_v55 }
 0x1d7   : > { %v1515_v51 = vxor.u32 2147483648, %v1514_v7  ;;  %v869_v18 = vshrl.u32 %v868_v50, 30  ;;  %v1524_v32 = vadd.s32 3, %v1520_v52  ;;  %vm809_vm10 = vcmp.lt.s32.totalorder %v2976_v38, 0 }
 0x1d8   : > { %v1563_v54 = vor.u32 %v1562_v53, %v1561_v20  ;;  %v3144_v46 = vadd.f32 %v2874_v39, %v2702_v60  ;;  %v1560_v19 = vor.u32 %v1559_v42, %v1558_v10  ;;  %v3148_v57 = vshll.u32 %v1543_v36, 8 }
 0x1d9   : > { %v1516_v26 = vsel %vm1433_vm15, %v1515_v51, %v1514_v7  ;;  %v870_v63 = vshll.u32 %v869_v18, 30  ;;  %v893_v28 = vsub.s32 4, %v869_v18  ;;  %v1566_v35 = vor.u32 %v1565_v15, %v1564_v21 }
 0x1da   : > { %v1519_v45 = vsel %vm3076_vm1, %v2878_v17, %v1516_v26  ;;  %vm1567_vm14 = vcmp.lt.s32.totalorder %v1548_v62, 1  ;;  %vm1570_vm11 = vcmp.lt.s32.totalorder %v1548_v62, 4  ;;  %vm1569_vm0 = vcmp.lt.s32.totalorder %v1548_v62, 3 }
 0x1db   : > { %2175 = vcosq.f32 %v1519_v45  ;;  %v3153_v34 = vsub.s32 %v867_v40, %v870_v63  ;;  %v1575_v60 = vsel %vm1567_vm14, %v1554_v49, %v1557_v12  ;;  %v1576_v0 = vsel %vm1570_vm11, %v1563_v54, 920167782 }
 0x1dc   : > { %2177 = vsinq.f32 %v1519_v45  ;;  %v914_v37 = vand.u32 2139095040, %v3144_v46  ;;  %v1551_v36 = vshrl.u32 %v2227_v23, %v1550_v55  ;;  %vm1568_vm15 = vcmp.lt.s32.totalorder %v1548_v62, 2 }
 0x1dd   : > { %v873_v11 = vsub.s32 0, %v3153_v34  ;;  %v1577_v59 = vsel %vm1569_vm0, %v1560_v19, %v1576_v0  ;;  %v1572_v43 = vsel %vm1570_vm11, %v1560_v19, 2102212464  ;;  %v1579_v48 = vsel %vm1567_vm14, %v1557_v12, %v1560_v19 }
 0x1de   : > { %v1578_v52 = vsel %vm1568_vm15, %v1575_v60, %v1577_v59  ;;  %v1580_v8 = vsel %vm1570_vm11, %v1566_v35, 1326507024  ;;  %v1525_v30 = vand.u32 3, %v1524_v32  ;;  %v894_v16 = vsel %vm809_vm10, %v893_v28, %v869_v18 }
 0x1df   : > { %v1885_v24 = vmin.u32 %v873_v11, %v3153_v34  ;;  %v1581_v9 = vsel %vm1569_vm0, %v1563_v54, %v1580_v8  ;;  %v3168_v55 = vmul.u32.u64.low %v3148_v57, %v1578_v52  ;;  %v3169_v25 = vmul.u32.u64.high %v3148_v57, %v1578_v52, %v3168_v55 }
 0x1e0   : > { %v1582_v3 = vsel %vm1568_vm15, %v1579_v48, %v1581_v9  ;;  %v915_v22 = vshrl.u32 %v914_v37, 23  ;;  %v1571_v40 = vsel %vm1567_vm14, %v1551_v36, %v1554_v49  ;;  %v1573_v56 = vsel %vm1569_vm0, %v1557_v12, %v1572_v43 }
 0x1e1   : > { %v875_v44 = vclz %v1885_v24  ;;  %vm3176_vm1 = vcmp.le.f32.partialorder %v807_v6, 0.7853982  ;;  %v3181_v13 = vmul.u32.u64.low %v3148_v57, %v1582_v3  ;;  %v3182_v1 = vmul.u32.u64.high %v3148_v57, %v1582_v3, %v3181_v13 }
 0x1e2   : > { %v1888_v10 = vadd.s32 4294967169, %v915_v22  ;;  %vm1523_vm2 = vweird.f32 %v2878_v17  ;;  %vm1526_vm3 = vcmp.lt.s32.totalorder %v1525_v30, 2  ;;  %v896_v50 = vsel %vm3176_vm1, 0, %v894_v16 }
 0x1e3   : > { %v1886_v7 = vadd.s32 4294967294, %v875_v44  ;;  %vm1527_vm4 = vcmp.eq.s32.totalorder %v1525_v30, 0  ;;  %v1574_v42 = vsel %vm1568_vm15, %v1571_v40, %v1573_v56  ;;  %v1593_v6 = vadd.s32 1, %v3169_v25 }
 0x1e4   : > { %v921_v20 = vadd.s32 1, %v1888_v10  ;;  %vm1530_vm5 = vcmp.eq.s32.totalorder %v1525_v30, 2  ;;  %v863_v53 = vadd.s32 %v3106_v14, %v3103_v58  ;;  %v911_v21 = vand.u32 2147483647, %v3144_v46 }
 0x1e5   : > { %v2176_v49 = vpop.eup %2175  ;;  %vm1887_vm6 = vcmp.lt.s32.totalorder %v1886_v7, 0  ;;  %v900_v15 = vadd.s32 3, %v896_v50  ;;  %vm1592_vm7 = vc.u32 %v3182_v1, %v3168_v55  ;;  %v1590_v26 = vmul.u32 %v3148_v57, %v1574_v42 }
 0x1e6   : > { %v2178_v51 = vpop.eup %2177  ;;  %v1531_v18 = vxor.u32 2147483648, %v2176_v49  ;;  %v878_v12 = vsel %vm1887_vm6, 0, %v1886_v7  ;;  %v1594_v58 = vsel %vm1592_vm7, %v1593_v6, %v3169_v25  ;;  %vm922_vm8 = vcmp.gt.s32.totalorder %v921_v20, 0 }
 0x1e7   : > { %v1528_v62 = vxor.u32 2147483648, %v2178_v51  ;;  %v879_v32 = vsub.s32 32, %v878_v12  ;;  %v883_v54 = vsub.s32 4294967266, %v878_v12  ;;  %v880_v19 = vshll.u32 %v3153_v34, %v878_v12 }
 0x1e8   : > { %v1532_v63 = vsel %vm1530_vm5, %v1531_v18, %v2178_v51  ;;  %v1595_v35 = vadd.s32 %v1594_v58, %v1590_v26  ;;  %v918_v0 = vand.u32 8388607, %v911_v21  ;;  %v923_v37 = vsel %vm922_vm8, %v921_v20, 0 }
 0x1e9   : > { %v1529_v14 = vsel %vm1527_vm4, %v2176_v49, %v1528_v62  ;;  %v881_v45 = vshrl.u32 %v863_v53, %v879_v32  ;;  %v884_v28 = vadd.s32 127, %v883_v54  ;;  %v3203_v57 = vadd.f32 %v2874_v39, %v2776_v5 }
 0x1ea   : > { %v1533_v60 = vsel %vm1526_vm3, %v1529_v14, %v1532_v63  ;;  %v1596_v59 = vadd.s32 536870912, %v1595_v35  ;;  %v925_v43 = vand.u32 31, %v923_v37  ;;  %v3210_v8 = vand.u32 3, %v900_v15 }
 0x1eb   : > { %v1534_v34 = vsel %vm1523_vm2, nan, %v1533_v60  ;;  %v882_v11 = vor.u32 %v881_v45, %v880_v19  ;;  %v885_v36 = vshll.u32 %v884_v28, 23  ;;  %v1642_v24 = vand.u32 2139095040, %v3203_v57 }
 0x1ec   : > { %1753 = vst [vmem:[%s2674_s6 + $0x50] sm:$0xff] %v1534_v34  ;;  %v3208_v48 = vshrl.u32 %v1596_v59, 30  ;;  %v926_v30 = vsub.s32 32, %v925_v43  ;;  %v919_v3 = vor.u32 8388608, %v918_v0  ;;  %v1639_v44 = vand.u32 2147483647, %v3203_v57 }
 0x1ed   : > { %v886_v52 = vor.u32 4788187, %v885_v36  ;;  %v889_v9 = vcvt.s32.f32 %v882_v11  ;;  %v928_v13 = vshll.u32 %v2227_v23, %v925_v43  ;;  %v924_v7 = vshrl.u32 %v923_v37, 5 }
 0x1ee   : > { %v1598_v5 = vshll.u32 %v3208_v48, 30  ;;  %v929_v17 = vshrl.u32 %v2228_v27, %v926_v30  ;;  %v932_v25 = vshrl.u32 %v2229_v29, %v926_v30  ;;  %v935_v22 = vshrl.u32 %v2230_v31, %v926_v30 }
 0x1ef   : > { %v887_v16 = vand.u32 2147483647, %v886_v52  ;;  %v938_v10 = vshrl.u32 %v2231_v33, %v926_v30  ;;  %v931_v50 = vshll.u32 %v2228_v27, %v925_v43  ;;  %v934_v42 = vshll.u32 %v2229_v29, %v925_v43 }
 0x1f0   : > { %v3218_v56 = vsub.s32 %v1595_v35, %v1598_v5  ;;  %v1643_v6 = vshrl.u32 %v1642_v24, 23  ;;  %v930_v53 = vor.u32 %v929_v17, %v928_v13  ;;  %v937_v51 = vshll.u32 %v2230_v31, %v925_v43 }
 0x1f1   : > { %v890_v40 = vmul.f32 %v889_v9, %v887_v16  ;;  %v933_v18 = vor.u32 %v932_v25, %v931_v50  ;;  %v936_v12 = vor.u32 %v935_v22, %v934_v42  ;;  %v940_v15 = vshll.u32 %v2231_v33, %v925_v43 }
 0x1f2   : > { %v1601_v49 = vsub.s32 0, %v3218_v56  ;;  %v941_v62 = vshrl.u32 %v2232_v41, %v926_v30  ;;  %vm1537_vm9 = vcmp.lt.s32.totalorder %v3015_v61, 0  ;;  %v939_v26 = vor.u32 %v938_v10, %v937_v51 }
 0x1f3   : > { %v891_v20 = vxor.u32 2147483648, %v890_v40  ;;  %v3232_v63 = vshll.u32 %v919_v3, 8  ;;  %v1621_v58 = vsub.s32 4, %v3208_v48  ;;  %v1916_v45 = vadd.s32 4294967169, %v1643_v6 }
 0x1f4   : > { %v1913_v54 = vmin.u32 %v1601_v49, %v3218_v56  ;;  %v942_v14 = vor.u32 %v941_v62, %v940_v15  ;;  %vm943_vm12 = vcmp.lt.s32.totalorder %v924_v7, 1  ;;  %vm946_vm13 = vcmp.lt.s32.totalorder %v924_v7, 4 }
 0x1f5   : > { %v892_v32 = vsel %vm809_vm10, %v891_v20, %v890_v40  ;;  %vm3240_vm10 = vcmp.le.f32.partialorder %v1535_v2, 0.7853982  ;;  %v927_v60 = vshrl.u32 %v2227_v23, %v926_v30  ;;  %v948_v0 = vsel %vm946_vm13, %v936_v12, 2102212464 }
 0x1f6   : > { %v895_v19 = vsel %vm3176_vm1, %v2976_v38, %v892_v32  ;;  %v1603_v28 = vclz %v1913_v54  ;;  %v951_v47 = vsel %vm943_vm12, %v930_v53, %v933_v18  ;;  %vm945_vm14 = vcmp.lt.s32.totalorder %v924_v7, 3 }
 0x1f7   : > { %2179 = vcosq.f32 %v895_v19  ;;  %v952_v34 = vsel %vm946_vm13, %v939_v26, 920167782  ;;  %v955_v11 = vsel %vm943_vm12, %v933_v18, %v936_v12  ;;  %vm944_vm11 = vcmp.lt.s32.totalorder %v924_v7, 2 }
 0x1f8   : > { %2181 = vsinq.f32 %v895_v19  ;;  %v1914_v37 = vadd.s32 4294967294, %v1603_v28  ;;  %v947_v36 = vsel %vm943_vm12, %v927_v60, %v930_v53  ;;  %v953_v59 = vsel %vm945_vm14, %v936_v12, %v952_v34 }
 0x1f9   : > { %v956_v43 = vsel %vm946_vm13, %v942_v14, 1326507024  ;;  %v949_v52 = vsel %vm945_vm14, %v933_v18, %v948_v0  ;;  %v954_v24 = vsel %vm944_vm11, %v951_v47, %v953_v59  ;;  %vm902_vm15 = vcmp.lt.s32.totalorder %v3210_v8, 2 }
 0x1fa   : > { %vm1915_vm0 = vcmp.lt.s32.totalorder %v1914_v37, 0  ;;  %v957_v2 = vsel %vm945_vm14, %v939_v26, %v956_v43  ;;  %v3248_v30 = vmul.u32.u64.low %v3232_v63, %v954_v24  ;;  %v3249_v5 = vmul.u32.u64.high %v3232_v63, %v954_v24, %v3248_v30 }
 0x1fb   : > { %v1606_v16 = vsel %vm1915_vm0, 0, %v1914_v37  ;;  %v958_v9 = vsel %vm944_vm11, %v955_v11, %v957_v2  ;;  %v1591_v3 = vadd.s32 %v3168_v55, %v3182_v1  ;;  %v1649_v22 = vadd.s32 1, %v1916_v45 }
 0x1fc   : > { %v1607_v17 = vsub.s32 32, %v1606_v16  ;;  %v1611_v25 = vsub.s32 4294967266, %v1606_v16  ;;  %vm899_vm1 = vweird.f32 %v2976_v38  ;;  %v1622_v40 = vsel %vm1537_vm9, %v1621_v58, %v3208_v48 }
 0x1fd   : > { %v950_v13 = vsel %vm944_vm11, %v947_v36, %v949_v52  ;;  %v3261_v10 = vmul.u32.u64.low %v3232_v63, %v958_v9  ;;  %v3262_v50 = vmul.u32.u64.high %v3232_v63, %v958_v9, %v3261_v10  ;;  %v1608_v42 = vshll.u32 %v3218_v56, %v1606_v16 }
 0x1fe   : > { %v1609_v6 = vshrl.u32 %v1591_v3, %v1607_v17  ;;  %v1612_v20 = vadd.s32 127, %v1611_v25  ;;  %vm1650_vm2 = vcmp.gt.s32.totalorder %v1649_v22, 0  ;;  %vm903_vm3 = vcmp.eq.s32.totalorder %v3210_v8, 0 }
 0x1ff   : > { %vm906_vm4 = vcmp.eq.s32.totalorder %v3210_v8, 2  ;;  %v969_v55 = vadd.s32 1, %v3249_v5  ;;  %v1651_v1 = vsel %vm1650_vm2, %v1649_v22, 0  ;;  %v1624_v53 = vsel %vm3240_vm10, 0, %v1622_v40 }
 0x200   : > { %v1610_v48 = vor.u32 %v1609_v6, %v1608_v42  ;;  %v1613_v7 = vshll.u32 %v1612_v20, 23  ;;  %v1653_v51 = vand.u32 31, %v1651_v1  ;;  %v966_v56 = vmul.u32 %v3232_v63, %v950_v13 }
 0x201   : > { %v2180_v49 = vpop.eup %2179  ;;  %vm968_vm5 = vc.u32 %v3262_v50, %v3248_v30  ;;  %v3275_v15 = vadd.f32 %v2874_v39, %v2859_v4  ;;  %v1646_v26 = vand.u32 8388607, %v1639_v44  ;;  %v1628_v58 = vadd.s32 3, %v1624_v53 }
 0x202   : > { %v2182_v18 = vpop.eup %2181  ;;  %v907_v12 = vxor.u32 2147483648, %v2180_v49  ;;  %v1614_v32 = vor.u32 4788187, %v1613_v7  ;;  %v970_v54 = vsel %vm968_vm5, %v969_v55, %v3249_v5  ;;  %v1654_v14 = vsub.s32 32, %v1653_v51 }
 0x203   : > { %v904_v62 = vxor.u32 2147483648, %v2182_v18  ;;  %v971_v63 = vadd.s32 %v970_v54, %v966_v56  ;;  %v1617_v4 = vcvt.s32.f32 %v1610_v48  ;;  %v1656_v39 = vshll.u32 %v2227_v23, %v1653_v51 }
 0x204   : > { %v908_v19 = vsel %vm906_vm4, %v907_v12, %v2182_v18  ;;  %v1615_v28 = vand.u32 2147483647, %v1614_v32  ;;  %v1659_v47 = vshll.u32 %v2228_v27, %v1653_v51  ;;  %v1662_v37 = vshll.u32 %v2229_v29, %v1653_v51 }
 0x205   : > { %v905_v45 = vsel %vm903_vm3, %v2180_v49, %v904_v62  ;;  %v972_v0 = vadd.s32 536870912, %v971_v63  ;;  %v1657_v36 = vshrl.u32 %v2228_v27, %v1654_v14  ;;  %v1660_v59 = vshrl.u32 %v2229_v29, %v1654_v14 }
 0x206   : > { %v909_v60 = vsel %vm902_vm15, %v905_v45, %v908_v19  ;;  %v1618_v11 = vmul.f32 %v1617_v4, %v1615_v28  ;;  %v1663_v52 = vshrl.u32 %v2230_v31, %v1654_v14  ;;  %v1665_v8 = vshll.u32 %v2230_v31, %v1653_v51 }
 0x207   : > { %v910_v34 = vsel %vm899_vm1, nan, %v909_v60  ;;  %v3294_v43 = vshrl.u32 %v972_v0, 30  ;;  %v1666_v24 = vshrl.u32 %v2231_v33, %v1654_v14  ;;  %v1668_v16 = vshll.u32 %v2231_v33, %v1653_v51 }
 0x208   : > { %1747 = vst [vmem:[%s2674_s6 + $0x20] sm:$0xff] %v910_v34  ;;  %v1619_v2 = vxor.u32 2147483648, %v1618_v11  ;;  %v1018_v38 = vand.u32 2139095040, %v3275_v15  ;;  %v1647_v5 = vor.u32 8388608, %v1646_v26  ;;  %v1652_v3 = vshrl.u32 %v1651_v1, 5 }
 0x209   : > { %v974_v9 = vshll.u32 %v3294_v43, 30  ;;  %v1669_v17 = vshrl.u32 %v2232_v41, %v1654_v14  ;;  %v1658_v22 = vor.u32 %v1657_v36, %v1656_v39  ;;  %v1661_v40 = vor.u32 %v1660_v59, %v1659_v47 }
 0x20a   : > { %v1620_v25 = vsel %vm1537_vm9, %v1619_v2, %v1618_v11  ;;  %v1667_v13 = vor.u32 %v1666_v24, %v1665_v8  ;;  %v3308_v42 = vand.u32 3, %v1628_v58  ;;  %v1664_v20 = vor.u32 %v1663_v52, %v1662_v37 }
 0x20b   : > { %v1623_v10 = vsel %vm3240_vm10, %v3015_v61, %v1620_v25  ;;  %v3310_v6 = vsub.s32 %v971_v63, %v974_v9  ;;  %v1655_v55 = vshrl.u32 %v2227_v23, %v1654_v14  ;;  %v1670_v1 = vor.u32 %v1669_v17, %v1668_v16 }
 0x20c   : > { %2183 = vcosq.f32 %v1623_v10  ;;  %v1019_v49 = vshrl.u32 %v1018_v38, 23  ;;  %vm1671_vm6 = vcmp.lt.s32.totalorder %v1652_v3, 1  ;;  %vm1674_vm7 = vcmp.lt.s32.totalorder %v1652_v3, 4 }
 0x20d   : > { %2185 = vsinq.f32 %v1623_v10  ;;  %v977_v48 = vsub.s32 0, %v3310_v6  ;;  %vm1673_vm8 = vcmp.lt.s32.totalorder %v1652_v3, 3  ;;  %v1679_v7 = vsel %vm1671_vm6, %v1658_v22, %v1661_v40 }
 0x20e   : > { %v1680_v53 = vsel %vm1674_vm7, %v1667_v13, 920167782  ;;  %v1687_v35 = vshll.u32 %v1647_v5, 8  ;;  %vm1672_vm9 = vcmp.lt.s32.totalorder %v1652_v3, 2  ;;  %v1676_v18 = vsel %vm1674_vm7, %v1664_v20, 2102212464 }
 0x20f   : > { %v1889_v51 = vmin.u32 %v977_v48, %v3310_v6  ;;  %v1681_v12 = vsel %vm1673_vm8, %v1664_v20, %v1680_v53  ;;  %v1683_v62 = vsel %vm1671_vm6, %v1661_v40, %v1664_v20  ;;  %v1684_v32 = vsel %vm1674_vm7, %v1670_v1, 1326507024 }
 0x210   : > { %v1682_v56 = vsel %vm1672_vm9, %v1679_v7, %v1681_v12  ;;  %v1892_v54 = vadd.s32 4294967169, %v1019_v49  ;;  %v1675_v19 = vsel %vm1671_vm6, %v1655_v55, %v1658_v22  ;;  %v1677_v58 = vsel %vm1673_vm8, %v1661_v40, %v1676_v18 }
 0x211   : > { %v979_v26 = vclz %v1889_v51  ;;  %v1685_v63 = vsel %vm1673_vm8, %v1667_v13, %v1684_v32  ;;  %v3316_v14 = vmul.u32.u64.low %v1687_v35, %v1682_v56  ;;  %v3317_v45 = vmul.u32.u64.high %v1687_v35, %v1682_v56, %v3316_v14 }
 0x212   : > { %v1686_v4 = vsel %vm1672_vm9, %v1683_v62, %v1685_v63  ;;  %v1025_v39 = vadd.s32 1, %v1892_v54  ;;  %vm1627_vm12 = vweird.f32 %v3015_v61  ;;  %vm1631_vm13 = vcmp.eq.s32.totalorder %v3308_v42, 0 }
 0x213   : > { %v1890_v28 = vadd.s32 4294967294, %v979_v26  ;;  %v3323_v60 = vmul.u32.u64.low %v1687_v35, %v1686_v4  ;;  %v3324_v0 = vmul.u32.u64.high %v1687_v35, %v1686_v4, %v3323_v60  ;;  %vm1634_vm10 = vcmp.eq.s32.totalorder %v3308_v42, 2 }
 0x214   : > { %v1678_v47 = vsel %vm1672_vm9, %v1675_v19, %v1677_v58  ;;  %vm1026_vm11 = vcmp.gt.s32.totalorder %v1025_v39, 0  ;;  %v967_v34 = vadd.s32 %v3248_v30, %v3262_v50  ;;  %v1697_v36 = vadd.s32 1, %v3317_v45 }
 0x215   : > { %vm1891_vm14 = vcmp.lt.s32.totalorder %v1890_v28, 0  ;;  %v1015_v59 = vand.u32 2147483647, %v3275_v15  ;;  %vm913_vm0 = vcmp.lt.s32.totalorder %v3144_v46, 0  ;;  %v1027_v16 = vsel %vm1026_vm11, %v1025_v39, 0 }
 0x216   : > { %v2184_v37 = vpop.eup %2183  ;;  %v982_v11 = vsel %vm1891_vm14, 0, %v1890_v28  ;;  %v1694_v5 = vmul.u32 %v1687_v35, %v1678_v47  ;;  %vm1696_vm15 = vc.u32 %v3324_v0, %v3316_v14  ;;  %vm1630_vm1 = vcmp.lt.s32.totalorder %v3308_v42, 2 }
 0x217   : > { %v2186_v52 = vpop.eup %2185  ;;  %v1635_v8 = vxor.u32 2147483648, %v2184_v37  ;;  %v983_v24 = vsub.s32 32, %v982_v11  ;;  %v987_v2 = vsub.s32 4294967266, %v982_v11  ;;  %v984_v9 = vshll.u32 %v3310_v6, %v982_v11 }
 0x218   : > { %v1632_v38 = vxor.u32 2147483648, %v2186_v52  ;;  %v1698_v17 = vsel %vm1696_vm15, %v1697_v36, %v3317_v45  ;;  %v1029_v40 = vand.u32 31, %v1027_v16  ;;  %vm3344_vm2 = vcmp.le.f32.partialorder %v911_v21, 0.7853982 }
 0x219   : > { %v1636_v30 = vsel %vm1634_vm10, %v1635_v8, %v2186_v52  ;;  %v985_v50 = vshrl.u32 %v967_v34, %v983_v24  ;;  %v988_v3 = vadd.s32 127, %v987_v2  ;;  %v1699_v22 = vadd.s32 %v1698_v17, %v1694_v5 }
 0x21a   : > { %v1633_v25 = vsel %vm1631_vm13, %v2184_v37, %v1632_v38  ;;  %v997_v1 = vsub.s32 4, %v3294_v43  ;;  %v1030_v48 = vsub.s32 32, %v1029_v40  ;;  %v1022_v53 = vand.u32 8388607, %v1015_v59 }
 0x21b   : > { %v1637_v13 = vsel %vm1630_vm1, %v1633_v25, %v1636_v30  ;;  %v986_v6 = vor.u32 %v985_v50, %v984_v9  ;;  %v989_v20 = vshll.u32 %v988_v3, 23  ;;  %v1700_v49 = vadd.s32 536870912, %v1699_v22 }
 0x21c   : > { %v1638_v55 = vsel %vm1627_vm12, nan, %v1637_v13  ;;  %v1032_v21 = vshll.u32 %v2227_v23, %v1029_v40  ;;  %v1033_v51 = vshrl.u32 %v2228_v27, %v1030_v48  ;;  %v1035_v18 = vshll.u32 %v2228_v27, %v1029_v40 }
 0x21d   : > { %1754 = vst [vmem:[%s2674_s6 + $0x58] sm:$0xff] %v1638_v55  ;;  %v990_v42 = vor.u32 4788187, %v989_v20  ;;  %v993_v7 = vcvt.s32.f32 %v986_v6  ;;  %v3355_v35 = vshrl.u32 %v1700_v49, 30  ;;  %v1036_v61 = vshrl.u32 %v2229_v29, %v1030_v48 }
 0x21e   : > { %v1039_v56 = vshrl.u32 %v2230_v31, %v1030_v48  ;;  %v1041_v62 = vshll.u32 %v2230_v31, %v1029_v40  ;;  %v1042_v32 = vshrl.u32 %v2231_v33, %v1030_v48  ;;  %v998_v54 = vsel %vm913_vm0, %v997_v1, %v3294_v43 }
 0x21f   : > { %v991_v12 = vand.u32 2147483647, %v990_v42  ;;  %v1702_v26 = vshll.u32 %v3355_v35, 30  ;;  %v1028_v19 = vshrl.u32 %v1027_v16, 5  ;;  %v1038_v58 = vshll.u32 %v2229_v29, %v1029_v40 }
 0x220   : > { %v1034_v27 = vor.u32 %v1033_v51, %v1032_v21  ;;  %v1037_v45 = vor.u32 %v1036_v61, %v1035_v18  ;;  %v1043_v28 = vor.u32 %v1042_v32, %v1041_v62  ;;  %v1044_v60 = vshll.u32 %v2231_v33, %v1029_v40 }
 0x221   : > { %v994_v63 = vmul.f32 %v993_v7, %v991_v12  ;;  %v1703_v4 = vsub.s32 %v1699_v22, %v1702_v26  ;;  %v1040_v39 = vor.u32 %v1039_v56, %v1038_v58  ;;  %v1045_v31 = vshrl.u32 %v2232_v41, %v1030_v48 }
 0x222   : > { %v1000_v37 = vsel %vm3344_vm2, 0, %v998_v54  ;;  %v1023_v43 = vor.u32 8388608, %v1022_v53  ;;  %vm1047_vm3 = vcmp.lt.s32.totalorder %v1028_v19, 1  ;;  %vm1050_vm4 = vcmp.lt.s32.totalorder %v1028_v19, 4 }
 0x223   : > { %v995_v47 = vxor.u32 2147483648, %v994_v63  ;;  %v1705_v34 = vsub.s32 0, %v1703_v4  ;;  %v1046_v11 = vor.u32 %v1045_v31, %v1044_v60  ;;  %v1031_v36 = vshrl.u32 %v2227_v23, %v1030_v48 }
 0x224   : > { %vm1049_vm5 = vcmp.lt.s32.totalorder %v1028_v19, 3  ;;  %v1056_v52 = vsel %vm1050_vm4, %v1043_v28, 920167782  ;;  %v1052_v8 = vsel %vm1050_vm4, %v1040_v39, 2102212464  ;;  %v1055_v24 = vsel %vm1047_vm3, %v1034_v27, %v1037_v45 }
 0x225   : > { %v996_v29 = vsel %vm913_vm0, %v995_v47, %v994_v63  ;;  %v1917_v41 = vmin.u32 %v1705_v34, %v1703_v4  ;;  %v1057_v2 = vsel %vm1049_vm5, %v1040_v39, %v1056_v52  ;;  %v1059_v16 = vsel %vm1047_vm3, %v1037_v45, %v1040_v39 }
 0x226   : > { %v999_v33 = vsel %vm3344_vm2, %v3144_v46, %v996_v29  ;;  %v1060_v38 = vsel %vm1050_vm4, %v1046_v11, 1326507024  ;;  %vm1048_vm6 = vcmp.lt.s32.totalorder %v1028_v19, 2  ;;  %v1063_v23 = vshll.u32 %v1023_v43, 8 }
 0x227   : > { %2187 = vcosq.f32 %v999_v33  ;;  %v1707_v9 = vclz %v1917_v41  ;;  %v1051_v5 = vsel %vm1047_vm3, %v1031_v36, %v1034_v27  ;;  %v1053_v30 = vsel %vm1049_vm5, %v1037_v45, %v1052_v8 }
 0x228   : > { %2189 = vsinq.f32 %v999_v33  ;;  %v1058_v50 = vsel %vm1048_vm6, %v1055_v24, %v1057_v2  ;;  %v1061_v3 = vsel %vm1049_vm5, %v1043_v28, %v1060_v38  ;;  %v1004_v13 = vadd.s32 3, %v1000_v37 }
 0x229   : > { %v1918_v17 = vadd.s32 4294967294, %v1707_v9  ;;  %v1062_v25 = vsel %vm1048_vm6, %v1059_v16, %v1061_v3  ;;  %v3384_v22 = vmul.u32.u64.low %v1063_v23, %v1058_v50  ;;  %v3385_v40 = vmul.u32.u64.high %v1063_v23, %v1058_v50, %v3384_v22 }
 0x22a   : > { %v3387_v10 = vmul.u32.u64.low %v1063_v23, %v1062_v25  ;;  %v3388_v6 = vmul.u32.u64.high %v1063_v23, %v1062_v25, %v3387_v10  ;;  %v1054_v20 = vsel %vm1048_vm6, %v1051_v5, %v1053_v30  ;;  %v1695_v1 = vadd.s32 %v3316_v14, %v3324_v0 }
 0x22b   : > { %vm1919_vm7 = vcmp.lt.s32.totalorder %v1918_v17, 0  ;;  %v1073_v42 = vadd.s32 1, %v3385_v40  ;;  %v1005_v7 = vand.u32 3, %v1004_v13  ;;  %v1070_v53 = vmul.u32 %v1063_v23, %v1054_v20 }
 0x22c   : > { %v1710_v55 = vsel %vm1919_vm7, 0, %v1918_v17  ;;  %vm1072_vm8 = vc.u32 %v3388_v6, %v3384_v22  ;;  %vm1003_vm10 = vweird.f32 %v3144_v46  ;;  %v1725_v47 = vsub.s32 4, %v3355_v35 }
 0x22d   : > { %v1711_v49 = vsub.s32 32, %v1710_v55  ;;  %v1715_v48 = vsub.s32 4294967266, %v1710_v55  ;;  %v1712_v21 = vshll.u32 %v1703_v4, %v1710_v55  ;;  %v1074_v61 = vsel %vm1072_vm8, %v1073_v42, %v3385_v40 }
 0x22e   : > { %v1075_v56 = vadd.s32 %v1074_v61, %v1070_v53  ;;  %vm1010_vm9 = vcmp.eq.s32.totalorder %v1005_v7, 2  ;;  %vm1007_vm12 = vcmp.eq.s32.totalorder %v1005_v7, 0  ;;  %vm1006_vm13 = vcmp.lt.s32.totalorder %v1005_v7, 2 }
 0x22f   : > { %v1713_v51 = vshrl.u32 %v1695_v1, %v1711_v49  ;;  %v1716_v18 = vadd.s32 127, %v1715_v48  ;;  %vm1641_vm14 = vcmp.lt.s32.totalorder %v3203_v57, 0  ;;  %vm1640_vm11 = vcmp.le.f32.partialorder %v1639_v44, 0.7853982 }
 0x230   : > { %v1076_v0 = vadd.s32 536870912, %v1075_v56  ;;  %v1726_v46 = vsel %vm1641_vm14, %v1725_v47, %v3355_v35  ;;  %v1071_v2 = vadd.s32 %v3384_v22, %v3388_v6  ;;  %vm1731_vm3 = vweird.f32 %v3203_v57 }
 0x231   : > { %v2188_v12 = vpop.eup %2187  ;;  %v1714_v54 = vor.u32 %v1713_v51, %v1712_v21  ;;  %v1717_v26 = vshll.u32 %v1716_v18, 23  ;;  %v1728_v52 = vsel %vm1640_vm11, 0, %v1726_v46  ;;  %vm1017_vm4 = vcmp.lt.s32.totalorder %v3275_v15, 0 }
 0x232   : > { %v2190_v62 = vpop.eup %2189  ;;  %v1011_v32 = vxor.u32 2147483648, %v2188_v12  ;;  %v1077_v27 = vshrl.u32 %v1076_v0, 30  ;;  %v1732_v8 = vadd.s32 3, %v1728_v52  ;;  %vm1016_vm5 = vcmp.le.f32.partialorder %v1015_v59, 0.7853982 }
 0x233   : > { %v1008_v14 = vxor.u32 2147483648, %v2190_v62  ;;  %v1718_v58 = vor.u32 4788187, %v1717_v26  ;;  %v1721_v4 = vcvt.s32.f32 %v1714_v54 }
 0x234   : > { %v1012_v19 = vsel %vm1010_vm9, %v1011_v32, %v2190_v62  ;;  %v1078_v60 = vshll.u32 %v1077_v27, 30  ;;  %v1733_v9 = vand.u32 3, %v1732_v8  ;;  %v1101_v49 = vsub.s32 4, %v1077_v27 }
 0x235   : > { %v1009_v63 = vsel %vm1007_vm12, %v2188_v12, %v1008_v14  ;;  %v1719_v28 = vand.u32 2147483647, %v1718_v58  ;;  %vm1107_vm9 = vweird.f32 %v3275_v15 }
 0x236   : > { %v1013_v45 = vsel %vm1006_vm13, %v1009_v63, %v1012_v19  ;;  %v1079_v37 = vsub.s32 %v1075_v56, %v1078_v60  ;;  %vm1738_vm15 = vcmp.eq.s32.totalorder %v1733_v9, 2  ;;  %vm1735_vm1 = vcmp.eq.s32.totalorder %v1733_v9, 0 }
 0x237   : > { %v1014_v39 = vsel %vm1003_vm10, nan, %v1013_v45  ;;  %v1722_v31 = vmul.f32 %v1721_v4, %v1719_v28  ;;  %vm1734_vm2 = vcmp.lt.s32.totalorder %v1733_v9, 2  ;;  %v1102_v7 = vsel %vm1017_vm4, %v1101_v49, %v1077_v27 }
 0x238   : > { %1748 = vst [vmem:[%s2674_s6 + $0x28] sm:$0xff] %v1014_v39  ;;  %v1081_v34 = vsub.s32 0, %v1079_v37  ;;  %v1104_v21 = vsel %vm1016_vm5, 0, %v1102_v7 }
 0x239   : > { %v1723_v43 = vxor.u32 2147483648, %v1722_v31 }
 0x23a   : > { %v1893_v36 = vmin.u32 %v1081_v34, %v1079_v37 }
 0x23b   : > { %v1724_v11 = vsel %vm1641_vm14, %v1723_v43, %v1722_v31 }
 0x23c   : > { %v1727_v29 = vsel %vm1640_vm11, %v3203_v57, %v1724_v11  ;;  %v1083_v33 = vclz %v1893_v36  ;;  %v1108_v57 = vadd.s32 3, %v1104_v21 }
 0x23d   : > { %2191 = vcosq.f32 %v1727_v29 }
 0x23e   : > { %2193 = vsinq.f32 %v1727_v29  ;;  %v1894_v41 = vadd.s32 4294967294, %v1083_v33  ;;  %v1109_v51 = vand.u32 3, %v1108_v57 }
 0x240   : > { %vm1895_vm0 = vcmp.lt.s32.totalorder %v1894_v41, 0  ;;  %vm1114_vm6 = vcmp.eq.s32.totalorder %v1109_v51, 2  ;;  %vm1111_vm7 = vcmp.eq.s32.totalorder %v1109_v51, 0  ;;  %vm1110_vm8 = vcmp.lt.s32.totalorder %v1109_v51, 2 }
 0x241   : > { %v1086_v24 = vsel %vm1895_vm0, 0, %v1894_v41 }
 0x242   : > { %v1087_v16 = vsub.s32 32, %v1086_v24  ;;  %v1091_v38 = vsub.s32 4294967266, %v1086_v24  ;;  %v1088_v44 = vshll.u32 %v1079_v37, %v1086_v24 }
 0x244   : > { %v1089_v23 = vshrl.u32 %v1071_v2, %v1087_v16  ;;  %v1092_v5 = vadd.s32 127, %v1091_v38 }
 0x246   : > { %v1090_v3 = vor.u32 %v1089_v23, %v1088_v44  ;;  %v1093_v17 = vshll.u32 %v1092_v5, 23 }
 0x247   : > { %v2192_v35 = vpop.eup %2191 }
 0x248   : > { %v2194_v30 = vpop.eup %2193  ;;  %v1739_v50 = vxor.u32 2147483648, %v2192_v35  ;;  %v1094_v13 = vor.u32 4788187, %v1093_v17  ;;  %v1097_v20 = vcvt.s32.f32 %v1090_v3 }
 0x249   : > { %v1736_v25 = vxor.u32 2147483648, %v2194_v30 }
 0x24a   : > { %v1740_v40 = vsel %vm1738_vm15, %v1739_v50, %v2194_v30  ;;  %v1095_v6 = vand.u32 2147483647, %v1094_v13 }
 0x24b   : > { %v1737_v10 = vsel %vm1735_vm1, %v2192_v35, %v1736_v25 }
 0x24c   : > { %v1741_v22 = vsel %vm1734_vm2, %v1737_v10, %v1740_v40  ;;  %v1098_v1 = vmul.f32 %v1097_v20, %v1095_v6 }
 0x24d   : > { %v1742_v55 = vsel %vm1731_vm3, nan, %v1741_v22 }
 0x24e   : > { %1755 = vst [vmem:[%s2674_s6 + $0x60] sm:$0xff] %v1742_v55  ;;  %v1099_v48 = vxor.u32 2147483648, %v1098_v1 }
 0x250   : > { %v1100_v42 = vsel %vm1017_vm4, %v1099_v48, %v1098_v1 }
 0x251   : > { %v1103_v53 = vsel %vm1016_vm5, %v3275_v15, %v1100_v42 }
 0x252   : > { %2195 = vcosq.f32 %v1103_v53 }
 0x253   : > { %2197 = vsinq.f32 %v1103_v53 }
 0x25c   : > { %v2196_v18 = vpop.eup %2195 }
 0x25d   : > { %v2198_v61 = vpop.eup %2197  ;;  %v1115_v12 = vxor.u32 2147483648, %v2196_v18 }
 0x25e   : > { %v1112_v56 = vxor.u32 2147483648, %v2198_v61 }
 0x25f   : > { %v1116_v62 = vsel %vm1114_vm6, %v1115_v12, %v2198_v61 }
 0x260   : > { %v1113_v32 = vsel %vm1111_vm7, %v2196_v18, %v1112_v56 }
 0x261   : > { %v1117_v59 = vsel %vm1110_vm8, %v1113_v32, %v1116_v62 }
 0x262   : > { %v1118_v54 = vsel %vm1107_vm9, nan, %v1117_v59 }
 0x263   : > { %1749 = vst [vmem:[%s2674_s6 + $0x30] sm:$0xff] %v1118_v54 }
 0x264 PF: > { %s13_s14 = sadd.s32 1, %s2222_s14   ;;  %s3447_s12 = smov %s2218_s13 }
 0x265   : > { %p10_p5 = scmp.ge.s32.totalorder %s13_s14, 4   ;;  %s3448_s13 = smov %s3450_s15 }
 0x267   :  { %12 = sbr.rel (!%p10_p5) target bundleno = 2 (0x2), region = 68 }

</bundles_post_ra>
